<compile_context>
chip_gen: v7x
topology: tpu7x:2x2x1
jax: 0.10.0
libtpu: 0.0.40
codegen_flags: <defaults>
</compile_context>

<pallas_src>
import jax
import jax.numpy as jnp
import numpy as np
from jax.experimental import pallas as pl
from jax.experimental.pallas import tpu as pltpu

EPS = 1e-5


def _encoder_kernel(x_ref, w1_ref, gb1_ref, w2_ref, gb2_ref,
                    w3_ref, gb3_ref, w4_ref, gb4_ref, o_ref):
    """Single-invocation fused forward: 4 x (matmul -> train-mode BN -> sigmoid)."""

    def bn_sigmoid(z, gb_ref):
        # Training-mode BN (batch mean, biased variance), affine fused into one FMA, sigmoid.
        gb = gb_ref[...]                       # (2, n): row 0 = gamma, row 1 = beta
        mean = jnp.mean(z, axis=0, keepdims=True)
        var = jnp.mean((z - mean) * (z - mean), axis=0, keepdims=True)
        scale = gb[0:1, :] * jax.lax.rsqrt(var + EPS)
        shift = gb[1:2, :] - mean * scale
        return jax.nn.sigmoid(z * scale + shift)

    # Layer 1
    z = jnp.dot(x_ref[...], w1_ref[...], preferred_element_type=jnp.float32)
    h = bn_sigmoid(z, gb1_ref)
    # Layer 2
    z = jnp.dot(h.astype(jnp.bfloat16), w2_ref[...], preferred_element_type=jnp.float32)
    h = bn_sigmoid(z, gb2_ref)
    # Layer 3
    z = jnp.dot(h.astype(jnp.bfloat16), w3_ref[...], preferred_element_type=jnp.float32)
    h = bn_sigmoid(z, gb3_ref)
    # Layer 4 (lane-padded output width)
    z = jnp.dot(h.astype(jnp.bfloat16), w4_ref[...], preferred_element_type=jnp.float32)
    o_ref[...] = bn_sigmoid(z, gb4_ref)


def encoder_forward(x_nchw, params):
    """x_nchw: [B, C, H, W] float32.
    params: list of (W[in,out] bf16, bias f32 (unused: exactly cancelled by train-mode BN),
    gamma f32, beta f32)."""
    B = x_nchw.shape[0]
    assert B >= 2, "train-mode BatchNorm1d needs batch statistics (B >= 2)"
    x_flat = x_nchw.reshape(B, -1).astype(jnp.bfloat16)      # nn.Flatten (row-major)
    n_in = x_flat.shape[1]

    (w1, _, g1, be1), (w2, _, g2, be2), (w3, _, g3, be3), (w4, _, g4, be4) = params
    n_h1, n_h2, n_h3, n_out = w1.shape[1], w2.shape[1], w3.shape[1], w4.shape[1]

    # Pad the last layer to a lane-dense (multiple-of-128) output; sliced back below.
    n_out_p = ((n_out + 127) // 128) * 128
    w4p = jnp.zeros((n_h3, n_out_p), w4.dtype).at[:, :n_out].set(w4)
    g4p = jnp.ones((n_out_p,), jnp.float32).at[:n_out].set(g4)
    be4p = jnp.zeros((n_out_p,), jnp.float32).at[:n_out].set(be4)

    gb = lambda g, be: jnp.stack([g, be]).astype(jnp.float32)   # (2, n): [gamma; beta]

    in_specs = [pl.BlockSpec(memory_space=pltpu.MemorySpace.VMEM) for _ in range(9)]
    out_spec = pl.BlockSpec(memory_space=pltpu.MemorySpace.VMEM)

    # Advisory cost hint for XLA's scheduler around this latency-bound custom call.
    flops = 2 * B * (n_in * n_h1 + n_h1 * n_h2 + n_h2 * n_h3 + n_h3 * n_out_p)
    transcendentals = B * (n_h1 + n_h2 + n_h3 + n_out_p)
    bytes_accessed = (x_flat.size * 2
                      + 2 * (w1.size + w2.size + w3.size + w4p.size)
                      + B * n_out_p * 4)

    out = pl.pallas_call(
        _encoder_kernel,
        out_shape=jax.ShapeDtypeStruct((B, n_out_p), jnp.float32),
        in_specs=in_specs,
        out_specs=out_spec,
        cost_estimate=pl.CostEstimate(flops=flops,
                                      transcendentals=transcendentals,
                                      bytes_accessed=bytes_accessed),
    )(x_flat,
      w1, gb(g1, be1),
      w2, gb(g2, be2),
      w3, gb(g3, be3),
      w4p, gb(g4p, be4p))
    return out[:, :n_out]


def _make_params(key, dims):
    """Deterministic Linear params (PyTorch-style uniform bound); weights kept as bf16 [in,out].
    BN gamma=1, beta=0 (PyTorch init)."""
    params = []
    for i in range(len(dims) - 1):
        fan_in, fan_out = dims[i], dims[i + 1]
        key, kw, kb = jax.random.split(key, 3)
        bound = 1.0 / np.sqrt(fan_in)
        # PyTorch Linear stores [out, in]; kernel consumes [in, out] -> transpose here.
        w_oi = jax.random.uniform(kw, (fan_out, fan_in), jnp.float32, -bound, bound)
        b = jax.random.uniform(kb, (fan_out,), jnp.float32, -bound, bound)
        gamma = jnp.ones((fan_out,), jnp.float32)
        beta = jnp.zeros((fan_out,), jnp.float32)
        params.append((w_oi.T.astype(jnp.bfloat16), b, gamma, beta))
    return params


def _reference(x_nchw, params):
    """Pure-JAX reference with full module semantics (Linear WITH bias, train-mode BN, sigmoid),
    using the same bf16 matmul path as the kernel."""
    h = x_nchw.reshape(x_nchw.shape[0], -1)
    for (w, b, g, be) in params:
        z = jnp.dot(h.astype(jnp.bfloat16), w, preferred_element_type=jnp.float32) + b
        mean = z.mean(axis=0, keepdims=True)
        var = ((z - mean) ** 2).mean(axis=0, keepdims=True)
        z = (z - mean) / jnp.sqrt(var + EPS) * g + be
        h = jax.nn.sigmoid(z)
    return h


if __name__ == "__main__":
    key = jax.random.PRNGKey(0)
    kx, kp = jax.random.split(key)

    B, C, H, W = 8, 4, 16, 16
    n_in = C * H * W                    # 1024
    n_h1, n_h2, n_h3, n_out = 512, 256, 128, 64

    x = jax.random.normal(kx, (B, C, H, W), jnp.float32)
    params = _make_params(kp, [n_in, n_h1, n_h2, n_h3, n_out])

    out = encoder_forward(x, params)
    out = jax.block_until_ready(out)

    ref = _reference(x, params)
    assert out.shape == (B, n_out)
    # Kernel drops the Linear bias (exactly cancelled by train-mode BN); tolerance covers
    # bf16 matmul operands / f32-accumulation ordering differences.
    assert np.allclose(np.asarray(out), np.asarray(ref), atol=2e-3, rtol=2e-3)

    print("KERNEL_OK")
</pallas_src>

<mosaic_0001>
module attributes {stable_mosaic.version = 11 : i64} {
  func.func @_encoder_kernel(%arg0: memref<8x1024xbf16, #tpu.memory_space<vmem>>, %arg1: memref<1024x512xbf16, #tpu.memory_space<vmem>>, %arg2: memref<2x512xf32, #tpu.memory_space<vmem>>, %arg3: memref<512x256xbf16, #tpu.memory_space<vmem>>, %arg4: memref<2x256xf32, #tpu.memory_space<vmem>>, %arg5: memref<256x128xbf16, #tpu.memory_space<vmem>>, %arg6: memref<2x128xf32, #tpu.memory_space<vmem>>, %arg7: memref<128x128xbf16, #tpu.memory_space<vmem>>, %arg8: memref<2x128xf32, #tpu.memory_space<vmem>>, %arg9: memref<8x128xf32, #tpu.memory_space<vmem>>) attributes {dimension_semantics = [], scalar_prefetch = 0 : i64, scratch_operands = 0 : i64, tpu.core_type = #tpu.core_type<tc>} {
    %c0 = arith.constant 0 : index
    %c0_0 = arith.constant 0 : index
    %0 = vector.load %arg0[%c0, %c0_0] : memref<8x1024xbf16, #tpu.memory_space<vmem>>, vector<8x1024xbf16>
    %c0_1 = arith.constant 0 : index
    %c0_2 = arith.constant 0 : index
    %1 = vector.load %arg1[%c0_1, %c0_2] : memref<1024x512xbf16, #tpu.memory_space<vmem>>, vector<1024x512xbf16>
    %cst = arith.constant dense<0.000000e+00> : vector<8x512xf32>
    %2 = tpu.matmul %0, %1, %cst {dimension_numbers = #tpu.dot_dimension_numbers<[1], [0], [0], [1], [0, 0, 1, 1], [], []>} : vector<8x1024xbf16>, vector<1024x512xbf16>, vector<8x512xf32> -> vector<8x512xf32>
    %c0_3 = arith.constant 0 : index
    %c0_4 = arith.constant 0 : index
    %3 = vector.load %arg2[%c0_3, %c0_4] : memref<2x512xf32, #tpu.memory_space<vmem>>, vector<2x512xf32>
    %cst_5 = arith.constant dense<0.000000e+00> : vector<512xf32>
    %4 = vector.multi_reduction <add>, %2, %cst_5 [0] : vector<8x512xf32> to vector<512xf32>
    %5 = vector.shape_cast %4 : vector<512xf32> to vector<1x512xf32>
    %cst_6 = arith.constant 8.000000e+00 : f32
    %6 = vector.broadcast %cst_6 : f32 to vector<1x512xf32>
    %7 = arith.divf %5, %6 : vector<1x512xf32>
    %8 = vector.broadcast %7 : vector<1x512xf32> to vector<8x512xf32>
    %9 = arith.subf %2, %8 : vector<8x512xf32>
    %10 = vector.broadcast %7 : vector<1x512xf32> to vector<8x512xf32>
    %11 = arith.subf %2, %10 : vector<8x512xf32>
    %12 = arith.mulf %9, %11 : vector<8x512xf32>
    %cst_7 = arith.constant dense<0.000000e+00> : vector<512xf32>
    %13 = vector.multi_reduction <add>, %12, %cst_7 [0] : vector<8x512xf32> to vector<512xf32>
    %14 = vector.shape_cast %13 : vector<512xf32> to vector<1x512xf32>
    %cst_8 = arith.constant 8.000000e+00 : f32
    %15 = vector.broadcast %cst_8 : f32 to vector<1x512xf32>
    %16 = arith.divf %14, %15 : vector<1x512xf32>
    %17 = vector.extract_strided_slice %3 {offsets = [0, 0], sizes = [1, 512], strides = [1, 1]} : vector<2x512xf32> to vector<1x512xf32>
    %cst_9 = arith.constant 9.99999974E-6 : f32
    %18 = vector.broadcast %cst_9 : f32 to vector<1x512xf32>
    %19 = arith.addf %16, %18 : vector<1x512xf32>
    %20 = math.rsqrt %19 : vector<1x512xf32>
    %21 = arith.mulf %17, %20 : vector<1x512xf32>
    %22 = vector.extract_strided_slice %3 {offsets = [1, 0], sizes = [1, 512], strides = [1, 1]} : vector<2x512xf32> to vector<1x512xf32>
    %23 = arith.mulf %7, %21 : vector<1x512xf32>
    %24 = arith.subf %22, %23 : vector<1x512xf32>
    %25 = vector.broadcast %21 : vector<1x512xf32> to vector<8x512xf32>
    %26 = arith.mulf %2, %25 : vector<8x512xf32>
    %27 = vector.broadcast %24 : vector<1x512xf32> to vector<8x512xf32>
    %28 = arith.addf %26, %27 : vector<8x512xf32>
    %29 = arith.negf %28 : vector<8x512xf32>
    %30 = math.exp %29 : vector<8x512xf32>
    %cst_10 = arith.constant 1.000000e+00 : f32
    %31 = vector.broadcast %cst_10 : f32 to vector<8x512xf32>
    %32 = arith.addf %31, %30 : vector<8x512xf32>
    %33 = arith.divf %31, %32 : vector<8x512xf32>
    %34 = arith.truncf %33 : vector<8x512xf32> to vector<8x512xbf16>
    %c0_11 = arith.constant 0 : index
    %c0_12 = arith.constant 0 : index
    %35 = vector.load %arg3[%c0_11, %c0_12] : memref<512x256xbf16, #tpu.memory_space<vmem>>, vector<512x256xbf16>
    %cst_13 = arith.constant dense<0.000000e+00> : vector<8x256xf32>
    %36 = tpu.matmul %34, %35, %cst_13 {dimension_numbers = #tpu.dot_dimension_numbers<[1], [0], [0], [1], [0, 0, 1, 1], [], []>} : vector<8x512xbf16>, vector<512x256xbf16>, vector<8x256xf32> -> vector<8x256xf32>
    %c0_14 = arith.constant 0 : index
    %c0_15 = arith.constant 0 : index
    %37 = vector.load %arg4[%c0_14, %c0_15] : memref<2x256xf32, #tpu.memory_space<vmem>>, vector<2x256xf32>
    %cst_16 = arith.constant dense<0.000000e+00> : vector<256xf32>
    %38 = vector.multi_reduction <add>, %36, %cst_16 [0] : vector<8x256xf32> to vector<256xf32>
    %39 = vector.shape_cast %38 : vector<256xf32> to vector<1x256xf32>
    %cst_17 = arith.constant 8.000000e+00 : f32
    %40 = vector.broadcast %cst_17 : f32 to vector<1x256xf32>
    %41 = arith.divf %39, %40 : vector<1x256xf32>
    %42 = vector.broadcast %41 : vector<1x256xf32> to vector<8x256xf32>
    %43 = arith.subf %36, %42 : vector<8x256xf32>
    %44 = vector.broadcast %41 : vector<1x256xf32> to vector<8x256xf32>
    %45 = arith.subf %36, %44 : vector<8x256xf32>
    %46 = arith.mulf %43, %45 : vector<8x256xf32>
    %cst_18 = arith.constant dense<0.000000e+00> : vector<256xf32>
    %47 = vector.multi_reduction <add>, %46, %cst_18 [0] : vector<8x256xf32> to vector<256xf32>
    %48 = vector.shape_cast %47 : vector<256xf32> to vector<1x256xf32>
    %cst_19 = arith.constant 8.000000e+00 : f32
    %49 = vector.broadcast %cst_19 : f32 to vector<1x256xf32>
    %50 = arith.divf %48, %49 : vector<1x256xf32>
    %51 = vector.extract_strided_slice %37 {offsets = [0, 0], sizes = [1, 256], strides = [1, 1]} : vector<2x256xf32> to vector<1x256xf32>
    %cst_20 = arith.constant 9.99999974E-6 : f32
    %52 = vector.broadcast %cst_20 : f32 to vector<1x256xf32>
    %53 = arith.addf %50, %52 : vector<1x256xf32>
    %54 = math.rsqrt %53 : vector<1x256xf32>
    %55 = arith.mulf %51, %54 : vector<1x256xf32>
    %56 = vector.extract_strided_slice %37 {offsets = [1, 0], sizes = [1, 256], strides = [1, 1]} : vector<2x256xf32> to vector<1x256xf32>
    %57 = arith.mulf %41, %55 : vector<1x256xf32>
    %58 = arith.subf %56, %57 : vector<1x256xf32>
    %59 = vector.broadcast %55 : vector<1x256xf32> to vector<8x256xf32>
    %60 = arith.mulf %36, %59 : vector<8x256xf32>
    %61 = vector.broadcast %58 : vector<1x256xf32> to vector<8x256xf32>
    %62 = arith.addf %60, %61 : vector<8x256xf32>
    %63 = arith.negf %62 : vector<8x256xf32>
    %64 = math.exp %63 : vector<8x256xf32>
    %cst_21 = arith.constant 1.000000e+00 : f32
    %65 = vector.broadcast %cst_21 : f32 to vector<8x256xf32>
    %66 = arith.addf %65, %64 : vector<8x256xf32>
    %67 = arith.divf %65, %66 : vector<8x256xf32>
    %68 = arith.truncf %67 : vector<8x256xf32> to vector<8x256xbf16>
    %c0_22 = arith.constant 0 : index
    %c0_23 = arith.constant 0 : index
    %69 = vector.load %arg5[%c0_22, %c0_23] : memref<256x128xbf16, #tpu.memory_space<vmem>>, vector<256x128xbf16>
    %cst_24 = arith.constant dense<0.000000e+00> : vector<8x128xf32>
    %70 = tpu.matmul %68, %69, %cst_24 {dimension_numbers = #tpu.dot_dimension_numbers<[1], [0], [0], [1], [0, 0, 1, 1], [], []>} : vector<8x256xbf16>, vector<256x128xbf16>, vector<8x128xf32> -> vector<8x128xf32>
    %c0_25 = arith.constant 0 : index
    %c0_26 = arith.constant 0 : index
    %71 = vector.load %arg6[%c0_25, %c0_26] : memref<2x128xf32, #tpu.memory_space<vmem>>, vector<2x128xf32>
    %cst_27 = arith.constant dense<0.000000e+00> : vector<128xf32>
    %72 = vector.multi_reduction <add>, %70, %cst_27 [0] : vector<8x128xf32> to vector<128xf32>
    %73 = vector.shape_cast %72 : vector<128xf32> to vector<1x128xf32>
    %cst_28 = arith.constant 8.000000e+00 : f32
    %74 = vector.broadcast %cst_28 : f32 to vector<1x128xf32>
    %75 = arith.divf %73, %74 : vector<1x128xf32>
    %76 = vector.broadcast %75 : vector<1x128xf32> to vector<8x128xf32>
    %77 = arith.subf %70, %76 : vector<8x128xf32>
    %78 = vector.broadcast %75 : vector<1x128xf32> to vector<8x128xf32>
    %79 = arith.subf %70, %78 : vector<8x128xf32>
    %80 = arith.mulf %77, %79 : vector<8x128xf32>
    %cst_29 = arith.constant dense<0.000000e+00> : vector<128xf32>
    %81 = vector.multi_reduction <add>, %80, %cst_29 [0] : vector<8x128xf32> to vector<128xf32>
    %82 = vector.shape_cast %81 : vector<128xf32> to vector<1x128xf32>
    %cst_30 = arith.constant 8.000000e+00 : f32
    %83 = vector.broadcast %cst_30 : f32 to vector<1x128xf32>
    %84 = arith.divf %82, %83 : vector<1x128xf32>
    %85 = vector.extract_strided_slice %71 {offsets = [0, 0], sizes = [1, 128], strides = [1, 1]} : vector<2x128xf32> to vector<1x128xf32>
    %cst_31 = arith.constant 9.99999974E-6 : f32
    %86 = vector.broadcast %cst_31 : f32 to vector<1x128xf32>
    %87 = arith.addf %84, %86 : vector<1x128xf32>
    %88 = math.rsqrt %87 : vector<1x128xf32>
    %89 = arith.mulf %85, %88 : vector<1x128xf32>
    %90 = vector.extract_strided_slice %71 {offsets = [1, 0], sizes = [1, 128], strides = [1, 1]} : vector<2x128xf32> to vector<1x128xf32>
    %91 = arith.mulf %75, %89 : vector<1x128xf32>
    %92 = arith.subf %90, %91 : vector<1x128xf32>
    %93 = vector.broadcast %89 : vector<1x128xf32> to vector<8x128xf32>
    %94 = arith.mulf %70, %93 : vector<8x128xf32>
    %95 = vector.broadcast %92 : vector<1x128xf32> to vector<8x128xf32>
    %96 = arith.addf %94, %95 : vector<8x128xf32>
    %97 = arith.negf %96 : vector<8x128xf32>
    %98 = math.exp %97 : vector<8x128xf32>
    %cst_32 = arith.constant 1.000000e+00 : f32
    %99 = vector.broadcast %cst_32 : f32 to vector<8x128xf32>
    %100 = arith.addf %99, %98 : vector<8x128xf32>
    %101 = arith.divf %99, %100 : vector<8x128xf32>
    %102 = arith.truncf %101 : vector<8x128xf32> to vector<8x128xbf16>
    %c0_33 = arith.constant 0 : index
    %c0_34 = arith.constant 0 : index
    %103 = vector.load %arg7[%c0_33, %c0_34] : memref<128x128xbf16, #tpu.memory_space<vmem>>, vector<128x128xbf16>
    %cst_35 = arith.constant dense<0.000000e+00> : vector<8x128xf32>
    %104 = tpu.matmul %102, %103, %cst_35 {dimension_numbers = #tpu.dot_dimension_numbers<[1], [0], [0], [1], [0, 0, 1, 1], [], []>} : vector<8x128xbf16>, vector<128x128xbf16>, vector<8x128xf32> -> vector<8x128xf32>
    %c0_36 = arith.constant 0 : index
    %c0_37 = arith.constant 0 : index
    %105 = vector.load %arg8[%c0_36, %c0_37] : memref<2x128xf32, #tpu.memory_space<vmem>>, vector<2x128xf32>
    %cst_38 = arith.constant dense<0.000000e+00> : vector<128xf32>
    %106 = vector.multi_reduction <add>, %104, %cst_38 [0] : vector<8x128xf32> to vector<128xf32>
    %107 = vector.shape_cast %106 : vector<128xf32> to vector<1x128xf32>
    %cst_39 = arith.constant 8.000000e+00 : f32
    %108 = vector.broadcast %cst_39 : f32 to vector<1x128xf32>
    %109 = arith.divf %107, %108 : vector<1x128xf32>
    %110 = vector.broadcast %109 : vector<1x128xf32> to vector<8x128xf32>
    %111 = arith.subf %104, %110 : vector<8x128xf32>
    %112 = vector.broadcast %109 : vector<1x128xf32> to vector<8x128xf32>
    %113 = arith.subf %104, %112 : vector<8x128xf32>
    %114 = arith.mulf %111, %113 : vector<8x128xf32>
    %cst_40 = arith.constant dense<0.000000e+00> : vector<128xf32>
    %115 = vector.multi_reduction <add>, %114, %cst_40 [0] : vector<8x128xf32> to vector<128xf32>
    %116 = vector.shape_cast %115 : vector<128xf32> to vector<1x128xf32>
    %cst_41 = arith.constant 8.000000e+00 : f32
    %117 = vector.broadcast %cst_41 : f32 to vector<1x128xf32>
    %118 = arith.divf %116, %117 : vector<1x128xf32>
    %119 = vector.extract_strided_slice %105 {offsets = [0, 0], sizes = [1, 128], strides = [1, 1]} : vector<2x128xf32> to vector<1x128xf32>
    %cst_42 = arith.constant 9.99999974E-6 : f32
    %120 = vector.broadcast %cst_42 : f32 to vector<1x128xf32>
    %121 = arith.addf %118, %120 : vector<1x128xf32>
    %122 = math.rsqrt %121 : vector<1x128xf32>
    %123 = arith.mulf %119, %122 : vector<1x128xf32>
    %124 = vector.extract_strided_slice %105 {offsets = [1, 0], sizes = [1, 128], strides = [1, 1]} : vector<2x128xf32> to vector<1x128xf32>
    %125 = arith.mulf %109, %123 : vector<1x128xf32>
    %126 = arith.subf %124, %125 : vector<1x128xf32>
    %127 = vector.broadcast %123 : vector<1x128xf32> to vector<8x128xf32>
    %128 = arith.mulf %104, %127 : vector<8x128xf32>
    %129 = vector.broadcast %126 : vector<1x128xf32> to vector<8x128xf32>
    %130 = arith.addf %128, %129 : vector<8x128xf32>
    %131 = arith.negf %130 : vector<8x128xf32>
    %132 = math.exp %131 : vector<8x128xf32>
    %cst_43 = arith.constant 1.000000e+00 : f32
    %133 = vector.broadcast %cst_43 : f32 to vector<8x128xf32>
    %134 = arith.addf %133, %132 : vector<8x128xf32>
    %135 = arith.divf %133, %134 : vector<8x128xf32>
    %c0_44 = arith.constant 0 : index
    %c0_45 = arith.constant 0 : index
    %136 = vector.load %arg9[%c0_44, %c0_45] : memref<8x128xf32, #tpu.memory_space<vmem>>, vector<8x128xf32>
    tpu.vector_store %arg9[%c0_44, %c0_45], %135 {strides = array<i32>} : memref<8x128xf32, #tpu.memory_space<vmem>>, vector<8x128xf32>,
    return
  }
}

</mosaic_0001>

<bundles_post_ra>
// kernel: tpu_custom_call.1
= control target key start
LH: loop header
LB: loop body
LE: loop exit
PB: predicated region body
PF: predicated region fallthrough
CT: control target
= control target key end

     0   :  { %14 = vsyncpa [#allocation3], 0  ;;  %s4650_s0 = inlined_call_operand.hbm [shape: bf16[8,1024], index: 0, kind: input, shape index: {}]   ;;  %s4651_s1 = inlined_call_operand.hbm [shape: bf16[1024,512], index: 1, kind: input, shape index: {}]   ;;  %s4652_s2 = inlined_call_operand.hbm [shape: f32[2,512], index: 2, kind: input, shape index: {}]   ;;  %s4653_s3 = inlined_call_operand.hbm [shape: bf16[512,256], index: 3, kind: input, shape index: {}]   ;;  %s4654_s4 = inlined_call_operand.vmem [shape: f32[2,256], index: 4, kind: input, shape index: {}]   ;;  %s4655_s5 = inlined_call_operand.hbm [shape: bf16[256,128], index: 5, kind: input, shape index: {}]   ;;  %s4656_s6 = inlined_call_operand.vmem [shape: f32[2,128], index: 6, kind: input, shape index: {}]   ;;  %s4657_s7 = inlined_call_operand.hbm [shape: bf16[128,128], index: 7, kind: input, shape index: {}]   ;;  %s4658_s8 = inlined_call_operand.vmem [shape: f32[2,128], index: 8, kind: input, shape index: {}]   ;;  %s4659_s9 = inlined_call_operand.hbm [shape: f32[8,128], index: 9, kind: output, shape index: {}]  }
   0x1   :  { %15 = vsyncpa [#allocation6], 0 }
   0x2   :  { %16 = vsyncpa [#allocation9], 0 }
   0x3   :  { %17 = vsyncpa [#allocation12], 0 }
   0x4   :  { %18 = vsyncpa [#allocation4], 0  ;;  %s4382_s30 = smov [#allocation5]   ;;  %s4218_s13 = scalar_lea.hbm %s4651_s1, 32768 }
   0x5   :  { %s34_s10 = sshll.u32 %s4382_s30, 4  ;;  %p4219_p0 = scmp.ne.s32.totalorder %s4651_s1, %s4218_s13  ;;  %s35_s10 = int_to_ptr.vmem [resolvable:$true] %s34_s10 }
   0x6   :  { %p4222_p1 = scmp.lt.u32.totalorder %s4218_s13, %s4651_s1 }
   0x8   :  { %p4224_p2 = pnand %p4222_p1, %p4219_p0 }
   0xa   :  { %4227 = shalt.err (!%p4224_p2)
}
   0xb   :  { %s4228_s18 = scalar_lea.vmem %s35_s10, 32768  ;;  %p4233_p4 = scmp.lt.s32.totalorder %s35_s10, %s35_s10 }
   0xc   :  { %p4229_p3 = scmp.ne.s32.totalorder %s35_s10, %s4228_s18  ;;  %p4234_p5 = scmp.lt.s32.totalorder %s4228_s18, %s4228_s18 }
   0xe   :  { %p4235_p6 = por %p4234_p5, %p4233_p4 }
  0x10   :  { %p4236_p7 = pnand %p4235_p6, %p4229_p3 }
  0x12   :  { %4239 = shalt.err (!%p4236_p7)
}
  0x13   :  { %s4383_s19 = smov 256   ;;  %s4384_s20 = smov 16  }
  0x14   :  { %40 = dma.hbm_to_vmem [thread:$0]  %s4651_s1, 32768, %s35_s10, [#allocation6], %s4383_s19, %s4383_s19, %s4384_s20  }
  0x15   :  { %s4385_s23 = smov [#allocation8]   ;;  %s4240_s27 = scalar_lea.hbm %s4653_s3, 8192 }
  0x16   :  { %s56_s24 = sshll.u32 %s4385_s23, 4  ;;  %p4241_p8 = scmp.ne.s32.totalorder %s4653_s3, %s4240_s27  ;;  %s57_s24 = int_to_ptr.vmem [resolvable:$true] %s56_s24 }
  0x17   :  { %p4244_p9 = scmp.lt.u32.totalorder %s4240_s27, %s4653_s3 }
  0x19   :  { %p4246_p10 = pnand %p4244_p9, %p4241_p8 }
  0x1b   :  { %4249 = shalt.err (!%p4246_p10)
}
  0x1c   :  { %s4250_s12 = scalar_lea.vmem %s57_s24, 8192  ;;  %p4255_p12 = scmp.lt.s32.totalorder %s57_s24, %s57_s24 }
  0x1d   :  { %p4251_p11 = scmp.ne.s32.totalorder %s57_s24, %s4250_s12  ;;  %p4256_p13 = scmp.lt.s32.totalorder %s4250_s12, %s4250_s12 }
  0x1f   :  { %p4257_p0 = por %p4256_p13, %p4255_p12 }
  0x21   :  { %p4258_p1 = pnand %p4257_p0, %p4251_p11 }
  0x23   :  { %4261 = shalt.err (!%p4258_p1)
}
  0x24   :  { %s4386_s1 = smov 128   ;;  %s4387_s10 = smov 8  }
  0x25   :  { %62 = dma.hbm_to_vmem [thread:$0]  %s4653_s3, 8192, %s57_s24, [#allocation9], %s4386_s1, %s4386_s1, %s4387_s10  }
  0x26   :  { %s4388_s15 = smov [#allocation2]   ;;  %s4389_s17 = smov [#allocation7]  }
  0x27   :  { %s25_s16 = sshll.u32 %s4388_s15, 4  ;;  %s47_s18 = sshll.u32 %s4389_s17, 4  ;;  %s26_s16 = int_to_ptr.vmem [resolvable:$true] %s25_s16  ;;  %s48_s18 = int_to_ptr.vmem [resolvable:$true] %s47_s18 }
  0x28   :  { %s4262_s21 = scalar_lea.hbm %s4650_s0, 512 }
  0x29   :  { %p4263_p2 = scmp.ne.s32.totalorder %s4650_s0, %s4262_s21  ;;  %p4266_p3 = scmp.lt.u32.totalorder %s4262_s21, %s4650_s0 }
  0x2b   :  { %p4268_p4 = pnand %p4266_p3, %p4263_p2 }
  0x2d   :  { %4271 = shalt.err (!%p4268_p4)
}
  0x2e   :  { %s4272_s3 = scalar_lea.vmem %s26_s16, 512  ;;  %p4277_p6 = scmp.lt.s32.totalorder %s26_s16, %s26_s16 }
  0x2f   :  { %p4273_p5 = scmp.ne.s32.totalorder %s26_s16, %s4272_s3  ;;  %p4278_p7 = scmp.lt.s32.totalorder %s4272_s3, %s4272_s3 }
  0x31   :  { %p4279_p8 = por %p4278_p7, %p4277_p6 }
  0x33   :  { %p4280_p9 = pnand %p4279_p8, %p4273_p5 }
  0x35   :  { %4283 = shalt.err (!%p4280_p9)
}
  0x36   :  { %28 = dma.hbm_to_vmem [thread:$0]  %s4650_s0, 512, %s26_s16, [#allocation3]  }
  0x37   :  { %s4284_s30 = scalar_lea.hbm %s4652_s2, 128 }
  0x38   :  { %p4285_p10 = scmp.ne.s32.totalorder %s4652_s2, %s4284_s30  ;;  %p4288_p11 = scmp.lt.u32.totalorder %s4284_s30, %s4652_s2 }
  0x3a   :  { %p4290_p12 = pnand %p4288_p11, %p4285_p10 }
  0x3c   :  { %4293 = shalt.err (!%p4290_p12)
}
  0x3d   :  { %s4294_s13 = scalar_lea.vmem %s48_s18, 128  ;;  %p4299_p0 = scmp.lt.s32.totalorder %s48_s18, %s48_s18 }
  0x3e   :  { %p4295_p13 = scmp.ne.s32.totalorder %s48_s18, %s4294_s13  ;;  %p4300_p1 = scmp.lt.s32.totalorder %s4294_s13, %s4294_s13 }
  0x40   :  { %p4301_p2 = por %p4300_p1, %p4299_p0 }
  0x42   :  { %p4302_p3 = pnand %p4301_p2, %p4295_p13 }
  0x44   :  { %4305 = shalt.err (!%p4302_p3)
}
  0x45   :  { %50 = dma.hbm_to_vmem [thread:$0]  %s4652_s2, 128, %s48_s18, [#allocation6]  }
  0x46   :  { %s4390_s15 = smov [#allocation10]   ;;  %s4306_s20 = scalar_lea.hbm %s4655_s5, 2048 }
  0x47   :  { %s70_s16 = sshll.u32 %s4390_s15, 4  ;;  %p4307_p4 = scmp.ne.s32.totalorder %s4655_s5, %s4306_s20  ;;  %s71_s16 = int_to_ptr.vmem [resolvable:$true] %s70_s16 }
  0x48   :  { %p4310_p5 = scmp.lt.u32.totalorder %s4306_s20, %s4655_s5 }
  0x4a   :  { %p4312_p6 = pnand %p4310_p5, %p4307_p4 }
  0x4c   :  { %4315 = shalt.err (!%p4312_p6)
}
  0x4d   :  { %s4316_s26 = scalar_lea.vmem %s71_s16, 2048  ;;  %p4321_p8 = scmp.lt.s32.totalorder %s71_s16, %s71_s16 }
  0x4e   :  { %p4317_p7 = scmp.ne.s32.totalorder %s71_s16, %s4316_s26  ;;  %p4322_p9 = scmp.lt.s32.totalorder %s4316_s26, %s4316_s26 }
  0x50   :  { %p4323_p10 = por %p4322_p9, %p4321_p8 }
  0x52   :  { %p4324_p11 = pnand %p4323_p10, %p4317_p7 }
  0x54   :  { %4327 = shalt.err (!%p4324_p11)
}
  0x55   :  { %s4391_s2 = smov 64   ;;  %s4392_s18 = smov 4  }
  0x56   :  { %76 = dma.hbm_to_vmem [thread:$0]  %s4655_s5, 2048, %s71_s16, [#allocation9], %s4391_s2, %s4391_s2, %s4392_s18  }
  0x57   :  { %s4393_s27 = smov [#allocation11]   ;;  %s4328_s11 = scalar_lea.hbm %s4657_s7, 1024 }
  0x58   :  { %s84_s28 = sshll.u32 %s4393_s27, 4  ;;  %p4329_p12 = scmp.ne.s32.totalorder %s4657_s7, %s4328_s11  ;;  %s85_s28 = int_to_ptr.vmem [resolvable:$true] %s84_s28 }
  0x59   :  { %p4332_p13 = scmp.lt.u32.totalorder %s4328_s11, %s4657_s7 }
  0x5b   :  { %p4334_p0 = pnand %p4332_p13, %p4329_p12 }
  0x5d   :  { %4337 = shalt.err (!%p4334_p0)
}
  0x5e   :  { %s4338_s0 = scalar_lea.vmem %s85_s28, 1024  ;;  %p4343_p2 = scmp.lt.s32.totalorder %s85_s28, %s85_s28 }
  0x5f   :  { %p4339_p1 = scmp.ne.s32.totalorder %s85_s28, %s4338_s0  ;;  %p4344_p3 = scmp.lt.s32.totalorder %s4338_s0, %s4338_s0 }
  0x61   :  { %p4345_p4 = por %p4344_p3, %p4343_p2 }
  0x63   :  { %p4346_p5 = pnand %p4345_p4, %p4339_p1 }
  0x65   :  { %4349 = shalt.err (!%p4346_p5)
}
  0x66   :  { %90 = dma.hbm_to_vmem [thread:$0]  %s4657_s7, 1024, %s85_s28, [#allocation12], %s4391_s2, %s4391_s2, %s4392_s18  }
  0x67   :  { %4372 = dma.done.wait [#allocation3], 512  }
  0x68   :  { %4373 = vsyncadd [#allocation3], 4294966784 }
  0x69   :  { %4374 = dma.done.wait [#allocation6], 32896  }
  0x6a   :  { %4375 = vsyncadd [#allocation6], 4294934400 }
  0x6b   :  { %4376 = dma.done.wait [#allocation9], 10240  }
  0x6c   :  { %4377 = vsyncadd [#allocation9], 4294957056 }
  0x6d   :  { %4378 = dma.done.wait [#allocation12], 1024  }
  0x6e   :  { %4379 = vsyncadd [#allocation12], 4294966272  ;;  %v3658_v0 = vld [vmem:[#allocation5 + $0x4] ss:$16 sps:$4 sm:$0xff]   ;;  %v3660_v1 = vld [vmem:[#allocation5 + $0xc] ss:$16 sps:$4 sm:$0xff]  }
  0x6f   :  { %1680 = vmatprep.subr.bf16.mxu0 %v3658_v0  ;;  %v3662_v2 = vld [vmem:[#allocation5] ss:$16 sps:$4 sm:$0xff]   ;;  %v3663_v3 = vld [vmem:[#allocation5 + $0x8] ss:$16 sps:$4 sm:$0xff]   ;;  %1844 = vmatprep.subr.bf16.mxu1 %v3660_v1  ;;  %v3664_v4 = vld [vmem:[#allocation5 + $0x24] ss:$16 sps:$4 sm:$0xff]  }
  0x70   :  { %1681 = vmatpush1.bf16.msra.mxu0 %v3662_v2  ;;  %1845 = vmatpush1.bf16.msra.mxu1 %v3663_v3  ;;  %v3666_v5 = vld [vmem:[#allocation5 + $0x2c] ss:$16 sps:$4 sm:$0xff]   ;;  %v3668_v6 = vld [vmem:[#allocation5 + $0x20] ss:$16 sps:$4 sm:$0xff]   ;;  %v3669_v7 = vld [vmem:[#allocation5 + $0x28] ss:$16 sps:$4 sm:$0xff]  }
  0x71   :  { %1682 = vmatprep.subr.bf16.mxu0 %v3664_v4  ;;  %1846 = vmatprep.subr.bf16.mxu1 %v3666_v5  ;;  %v3670_v8 = vld [vmem:[#allocation5 + $0x44] ss:$16 sps:$4 sm:$0xff]   ;;  %v3672_v9 = vld [vmem:[#allocation5 + $0x4c] ss:$16 sps:$4 sm:$0xff]   ;;  %v3674_v10 = vld [vmem:[#allocation5 + $0x40] ss:$16 sps:$4 sm:$0xff]  }
  0x72   :  { %v3675_v11 = vld [vmem:[#allocation5 + $0x48] ss:$16 sps:$4 sm:$0xff]   ;;  %v3676_v12 = vld [vmem:[#allocation5 + $0x64] ss:$16 sps:$4 sm:$0xff]   ;;  %v3678_v13 = vld [vmem:[#allocation5 + $0x6c] ss:$16 sps:$4 sm:$0xff]  }
  0x73   :  { %v3680_v14 = vld [vmem:[#allocation5 + $0x60] ss:$16 sps:$4 sm:$0xff]   ;;  %v3681_v15 = vld [vmem:[#allocation5 + $0x68] ss:$16 sps:$4 sm:$0xff]   ;;  %v3682_v16 = vld [vmem:[#allocation5 + $0x84] ss:$16 sps:$4 sm:$0xff]  }
  0x74   :  { %1683 = vmatpush1.bf16.msra.mxu0 %v3668_v6  ;;  %1847 = vmatpush1.bf16.msra.mxu1 %v3669_v7  ;;  %v3684_v17 = vld [vmem:[#allocation5 + $0x8c] ss:$16 sps:$4 sm:$0xff]   ;;  %v3686_v18 = vld [vmem:[#allocation5 + $0x80] ss:$16 sps:$4 sm:$0xff]   ;;  %v3687_v19 = vld [vmem:[#allocation5 + $0x88] ss:$16 sps:$4 sm:$0xff]  }
  0x75   :  { %1684 = vmatprep.subr.bf16.mxu0 %v3670_v8  ;;  %1848 = vmatprep.subr.bf16.mxu1 %v3672_v9  ;;  %v3688_v20 = vld [vmem:[#allocation5 + $0xa4] ss:$16 sps:$4 sm:$0xff]   ;;  %v3690_v21 = vld [vmem:[#allocation5 + $0xac] ss:$16 sps:$4 sm:$0xff]   ;;  %v3692_v22 = vld [vmem:[#allocation5 + $0xa0] ss:$16 sps:$4 sm:$0xff]  }
  0x76   :  { %v3693_v23 = vld [vmem:[#allocation5 + $0xa8] ss:$16 sps:$4 sm:$0xff]   ;;  %v3694_v24 = vld [vmem:[#allocation5 + $0xc4] ss:$16 sps:$4 sm:$0xff]   ;;  %v3696_v25 = vld [vmem:[#allocation5 + $0xcc] ss:$16 sps:$4 sm:$0xff]  }
  0x77   :  { %v3698_v26 = vld [vmem:[#allocation5 + $0xc0] ss:$16 sps:$4 sm:$0xff]   ;;  %v3699_v27 = vld [vmem:[#allocation5 + $0xc8] ss:$16 sps:$4 sm:$0xff]   ;;  %v3700_v28 = vld [vmem:[#allocation5 + $0xe4] ss:$16 sps:$4 sm:$0xff]  }
  0x78   :  { %1685 = vmatpush1.bf16.msra.mxu0 %v3674_v10  ;;  %1849 = vmatpush1.bf16.msra.mxu1 %v3675_v11  ;;  %v3702_v29 = vld [vmem:[#allocation5 + $0xec] ss:$16 sps:$4 sm:$0xff]   ;;  %v3704_v30 = vld [vmem:[#allocation5 + $0xe0] ss:$16 sps:$4 sm:$0xff]   ;;  %v3705_v31 = vld [vmem:[#allocation5 + $0xe8] ss:$16 sps:$4 sm:$0xff]  }
  0x79   :  { %1686 = vmatprep.subr.bf16.mxu0 %v3676_v12  ;;  %1850 = vmatprep.subr.bf16.mxu1 %v3678_v13  ;;  %v3706_v32 = vld [vmem:[#allocation5 + $0x104] ss:$16 sps:$4 sm:$0xff]   ;;  %v3708_v33 = vld [vmem:[#allocation5 + $0x10c] ss:$16 sps:$4 sm:$0xff]   ;;  %v3710_v34 = vld [vmem:[#allocation5 + $0x100] ss:$16 sps:$4 sm:$0xff]  }
  0x7a   :  { %v3711_v35 = vld [vmem:[#allocation5 + $0x108] ss:$16 sps:$4 sm:$0xff]   ;;  %v3712_v36 = vld [vmem:[#allocation5 + $0x124] ss:$16 sps:$4 sm:$0xff]   ;;  %v3714_v37 = vld [vmem:[#allocation5 + $0x12c] ss:$16 sps:$4 sm:$0xff]  }
  0x7b   :  { %v3716_v38 = vld [vmem:[#allocation5 + $0x120] ss:$16 sps:$4 sm:$0xff]   ;;  %v3717_v39 = vld [vmem:[#allocation5 + $0x128] ss:$16 sps:$4 sm:$0xff]   ;;  %v3718_v40 = vld [vmem:[#allocation5 + $0x144] ss:$16 sps:$4 sm:$0xff]  }
  0x7c   :  { %1687 = vmatpush1.bf16.msra.mxu0 %v3680_v14  ;;  %1851 = vmatpush1.bf16.msra.mxu1 %v3681_v15  ;;  %v3720_v41 = vld [vmem:[#allocation5 + $0x14c] ss:$16 sps:$4 sm:$0xff]   ;;  %v3722_v42 = vld [vmem:[#allocation5 + $0x140] ss:$16 sps:$4 sm:$0xff]   ;;  %v3723_v43 = vld [vmem:[#allocation5 + $0x148] ss:$16 sps:$4 sm:$0xff]  }
  0x7d   :  { %1688 = vmatprep.subr.bf16.mxu0 %v3682_v16  ;;  %1852 = vmatprep.subr.bf16.mxu1 %v3684_v17  ;;  %v3724_v44 = vld [vmem:[#allocation5 + $0x164] ss:$16 sps:$4 sm:$0xff]   ;;  %v3726_v45 = vld [vmem:[#allocation5 + $0x16c] ss:$16 sps:$4 sm:$0xff]   ;;  %v3728_v47 = vld [vmem:[#allocation5 + $0x160] ss:$16 sps:$4 sm:$0xff]  }
  0x7e   :  { %v112_v46 = vld [vmem:[#allocation2] sm:$0xff]  ;;  %v3729_v49 = vld [vmem:[#allocation5 + $0x168] ss:$16 sps:$4 sm:$0xff]   ;;  %v3732_v51 = vld [vmem:[#allocation5 + $0x18c] ss:$16 sps:$4 sm:$0xff]   ;;  %vm4396_vm0 = vmmov 0  }
  0x7f   :  { %v3204_v48 = vcombine.high %v112_v46, %v112_v46  ;;  %v3730_v50 = vld [vmem:[#allocation5 + $0x184] ss:$16 sps:$4 sm:$0xff]   ;;  %v3734_v52 = vld [vmem:[#allocation5 + $0x180] ss:$16 sps:$4 sm:$0xff]   ;;  %v3735_v53 = vld [vmem:[#allocation5 + $0x188] ss:$16 sps:$4 sm:$0xff]   ;;  %v3203_v4 = vcombine.low %v112_v46, %v112_v46 }
  0x80   :  { %1689 = vmatpush1.bf16.msra.mxu0 %v3686_v18  ;;  %1853 = vmatpush1.bf16.msra.mxu1 %v3687_v19  ;;  %v3736_v54 = vld [vmem:[#allocation5 + $0x1a4] ss:$16 sps:$4 sm:$0xff]   ;;  %v3738_v55 = vld [vmem:[#allocation5 + $0x1ac] ss:$16 sps:$4 sm:$0xff]   ;;  %v3740_v56 = vld [vmem:[#allocation5 + $0x1a0] ss:$16 sps:$4 sm:$0xff]  }
  0x81   :  { %1690 = vmatprep.subr.bf16.mxu0 %v3688_v20  ;;  %1854 = vmatprep.subr.bf16.mxu1 %v3690_v21  ;;  %v3741_v57 = vld [vmem:[#allocation5 + $0x1a8] ss:$16 sps:$4 sm:$0xff]   ;;  %v3742_v58 = vld [vmem:[#allocation5 + $0x1c4] ss:$16 sps:$4 sm:$0xff]   ;;  %v3744_v59 = vld [vmem:[#allocation5 + $0x1cc] ss:$16 sps:$4 sm:$0xff]  }
  0x82   :  { %1712 = vmatprep.mubr.bf16.mxu0 %v3204_v48  ;;  %1876 = vmatprep.mubr.bf16.mxu1 %v3204_v48  ;;  %v3746_v60 = vld [vmem:[#allocation5 + $0x1c0] ss:$16 sps:$4 sm:$0xff]   ;;  %v3747_v61 = vld [vmem:[#allocation5 + $0x1c8] ss:$16 sps:$4 sm:$0xff]   ;;  %v3748_v62 = vld [vmem:[#allocation5 + $0x1e4] ss:$16 sps:$4 sm:$0xff]  }
  0x83   :  { %v3750_v63 = vld [vmem:[#allocation5 + $0x1ec] ss:$16 sps:$4 sm:$0xff]   ;;  %v3752_v0 = vld [vmem:[#allocation5 + $0x1e0] ss:$16 sps:$4 sm:$0xff]   ;;  %v3753_v1 = vld [vmem:[#allocation5 + $0x1e8] ss:$16 sps:$4 sm:$0xff]  }
  0x84   :  { %1691 = vmatpush1.bf16.msra.mxu0 %v3692_v22  ;;  %1855 = vmatpush1.bf16.msra.mxu1 %v3693_v23  ;;  %v3758_v2 = vld [vmem:[#allocation5 + $0x204] ss:$16 sps:$4 sm:$0xff]   ;;  %v3761_v3 = vld [vmem:[#allocation5 + $0x20c] ss:$16 sps:$4 sm:$0xff]   ;;  %v3756_v5 = vld [vmem:[#allocation5 + $0x200] ss:$16 sps:$4 sm:$0xff]  }
  0x85   :  { %1692 = vmatprep.subr.bf16.mxu0 %v3694_v24  ;;  %1856 = vmatprep.subr.bf16.mxu1 %v3696_v25  ;;  %v3759_v6 = vld [vmem:[#allocation5 + $0x208] ss:$16 sps:$4 sm:$0xff]   ;;  %v3764_v7 = vld [vmem:[#allocation5 + $0x224] ss:$16 sps:$4 sm:$0xff]   ;;  %v3767_v8 = vld [vmem:[#allocation5 + $0x22c] ss:$16 sps:$4 sm:$0xff]  }
  0x86   :  { %v3762_v9 = vld [vmem:[#allocation5 + $0x220] ss:$16 sps:$4 sm:$0xff]   ;;  %v3765_v10 = vld [vmem:[#allocation5 + $0x228] ss:$16 sps:$4 sm:$0xff]   ;;  %v3770_v11 = vld [vmem:[#allocation5 + $0x244] ss:$16 sps:$4 sm:$0xff]  }
  0x87   :  { %v3773_v12 = vld [vmem:[#allocation5 + $0x24c] ss:$16 sps:$4 sm:$0xff]   ;;  %v3768_v13 = vld [vmem:[#allocation5 + $0x240] ss:$16 sps:$4 sm:$0xff]   ;;  %v3771_v14 = vld [vmem:[#allocation5 + $0x248] ss:$16 sps:$4 sm:$0xff]  }
  0x88   :  { %1693 = vmatpush1.bf16.msra.mxu0 %v3698_v26  ;;  %1857 = vmatpush1.bf16.msra.mxu1 %v3699_v27  ;;  %v3776_v15 = vld [vmem:[#allocation5 + $0x264] ss:$16 sps:$4 sm:$0xff]   ;;  %v3779_v16 = vld [vmem:[#allocation5 + $0x26c] ss:$16 sps:$4 sm:$0xff]   ;;  %v3774_v17 = vld [vmem:[#allocation5 + $0x260] ss:$16 sps:$4 sm:$0xff]  }
  0x89   :  { %1694 = vmatprep.subr.bf16.mxu0 %v3700_v28  ;;  %1858 = vmatprep.subr.bf16.mxu1 %v3702_v29  ;;  %v3777_v18 = vld [vmem:[#allocation5 + $0x268] ss:$16 sps:$4 sm:$0xff]   ;;  %v3782_v19 = vld [vmem:[#allocation5 + $0x284] ss:$16 sps:$4 sm:$0xff]   ;;  %v3785_v20 = vld [vmem:[#allocation5 + $0x28c] ss:$16 sps:$4 sm:$0xff]  }
  0x8a   :  { %v3780_v21 = vld [vmem:[#allocation5 + $0x280] ss:$16 sps:$4 sm:$0xff]   ;;  %v3783_v22 = vld [vmem:[#allocation5 + $0x288] ss:$16 sps:$4 sm:$0xff]   ;;  %v3788_v23 = vld [vmem:[#allocation5 + $0x2a4] ss:$16 sps:$4 sm:$0xff]  }
  0x8b   :  { %v3791_v24 = vld [vmem:[#allocation5 + $0x2ac] ss:$16 sps:$4 sm:$0xff]   ;;  %v3786_v25 = vld [vmem:[#allocation5 + $0x2a0] ss:$16 sps:$4 sm:$0xff]   ;;  %v3789_v26 = vld [vmem:[#allocation5 + $0x2a8] ss:$16 sps:$4 sm:$0xff]  }
  0x8c   :  { %1695 = vmatpush1.bf16.msra.mxu0 %v3704_v30  ;;  %1859 = vmatpush1.bf16.msra.mxu1 %v3705_v31  ;;  %v3794_v27 = vld [vmem:[#allocation5 + $0x2c4] ss:$16 sps:$4 sm:$0xff]   ;;  %v3797_v28 = vld [vmem:[#allocation5 + $0x2cc] ss:$16 sps:$4 sm:$0xff]   ;;  %v3792_v31 = vld [vmem:[#allocation5 + $0x2c0] ss:$16 sps:$4 sm:$0xff]  }
  0x8d   :  { %1696 = vmatprep.subr.bf16.mxu0 %v3706_v32  ;;  %1860 = vmatprep.subr.bf16.mxu1 %v3708_v33  ;;  %v4520_v29 = vld [vmem:[#allocation2 + $0x8] sm:$0xff]  ;;  %v3800_v33 = vld [vmem:[#allocation5 + $0x2e4] ss:$16 sps:$4 sm:$0xff]   ;;  %s4397_s19 = smov [#allocation13]  }
  0x8e   :  { %v3206_v30 = vcombine.high %v4520_v29, %v4520_v29  ;;  %v3795_v32 = vld [vmem:[#allocation5 + $0x2c8] ss:$16 sps:$4 sm:$0xff]   ;;  %v3821_v46 = vld [vmem:[#allocation5 + $0x34c] ss:$16 sps:$4 sm:$0xff]   ;;  %s3191_s20 = sshll.u32 %s4397_s19, 4  ;;  %s3192_s20 = int_to_ptr.vmem [resolvable:$true] %s3191_s20 }
  0x8f   :  { %v3819_v48 = vld [vmem:[#allocation5 + $0x348] ss:$16 sps:$4 sm:$0xff]   ;;  %p4355_p7 = scmp.lt.s32.totalorder %s3192_s20, %s3192_s20 }
  0x90   :  { %1697 = vmatpush1.bf16.msra.mxu0 %v3710_v34  ;;  %1861 = vmatpush1.bf16.msra.mxu1 %v3711_v35  ;;  %v3803_v34 = vld [vmem:[#allocation5 + $0x2ec] ss:$16 sps:$4 sm:$0xff]   ;;  %v3798_v35 = vld [vmem:[#allocation5 + $0x2e0] ss:$16 sps:$4 sm:$0xff]  }
  0x91   :  { %1698 = vmatprep.subr.bf16.mxu0 %v3712_v36  ;;  %1862 = vmatprep.subr.bf16.mxu1 %v3714_v37  ;;  %v3801_v36 = vld [vmem:[#allocation5 + $0x2e8] ss:$16 sps:$4 sm:$0xff]   ;;  %v3806_v37 = vld [vmem:[#allocation5 + $0x304] ss:$16 sps:$4 sm:$0xff]  }
  0x94   :  { %1699 = vmatpush1.bf16.msra.mxu0 %v3716_v38  ;;  %1863 = vmatpush1.bf16.msra.mxu1 %v3717_v39  ;;  %v3809_v38 = vld [vmem:[#allocation5 + $0x30c] ss:$16 sps:$4 sm:$0xff]   ;;  %v3804_v39 = vld [vmem:[#allocation5 + $0x300] ss:$16 sps:$4 sm:$0xff]  }
  0x95   :  { %1700 = vmatprep.subr.bf16.mxu0 %v3718_v40  ;;  %1864 = vmatprep.subr.bf16.mxu1 %v3720_v41  ;;  %v3807_v40 = vld [vmem:[#allocation5 + $0x308] ss:$16 sps:$4 sm:$0xff]   ;;  %v3812_v41 = vld [vmem:[#allocation5 + $0x324] ss:$16 sps:$4 sm:$0xff]  }
  0x98   :  { %1701 = vmatpush1.bf16.msra.mxu0 %v3722_v42  ;;  %1865 = vmatpush1.bf16.msra.mxu1 %v3723_v43  ;;  %v3815_v42 = vld [vmem:[#allocation5 + $0x32c] ss:$16 sps:$4 sm:$0xff]   ;;  %v3810_v43 = vld [vmem:[#allocation5 + $0x320] ss:$16 sps:$4 sm:$0xff]  }
  0x99   :  { %1702 = vmatprep.subr.bf16.mxu0 %v3724_v44  ;;  %1866 = vmatprep.subr.bf16.mxu1 %v3726_v45  ;;  %v3813_v44 = vld [vmem:[#allocation5 + $0x328] ss:$16 sps:$4 sm:$0xff]   ;;  %v3818_v45 = vld [vmem:[#allocation5 + $0x344] ss:$16 sps:$4 sm:$0xff]  }
  0x9c   :  { %1703 = vmatpush1.bf16.msra.mxu0 %v3728_v47  ;;  %1867 = vmatpush1.bf16.msra.mxu1 %v3729_v49  ;;  %v3816_v47 = vld [vmem:[#allocation5 + $0x340] ss:$16 sps:$4 sm:$0xff]   ;;  %v3824_v49 = vld [vmem:[#allocation5 + $0x364] ss:$16 sps:$4 sm:$0xff]  }
  0x9d   :  { %1704 = vmatprep.subr.bf16.mxu0 %v3730_v50  ;;  %1868 = vmatprep.subr.bf16.mxu1 %v3732_v51  ;;  %v3827_v50 = vld [vmem:[#allocation5 + $0x36c] ss:$16 sps:$4 sm:$0xff]   ;;  %v3822_v51 = vld [vmem:[#allocation5 + $0x360] ss:$16 sps:$4 sm:$0xff]  }
  0xa0   :  { %1705 = vmatpush1.bf16.msra.mxu0 %v3734_v52  ;;  %1869 = vmatpush1.bf16.msra.mxu1 %v3735_v53  ;;  %v3825_v52 = vld [vmem:[#allocation5 + $0x368] ss:$16 sps:$4 sm:$0xff]   ;;  %v3830_v53 = vld [vmem:[#allocation5 + $0x384] ss:$16 sps:$4 sm:$0xff]  }
  0xa1   :  { %1706 = vmatprep.subr.bf16.mxu0 %v3736_v54  ;;  %1870 = vmatprep.subr.bf16.mxu1 %v3738_v55  ;;  %v3833_v54 = vld [vmem:[#allocation5 + $0x38c] ss:$16 sps:$4 sm:$0xff]   ;;  %v3828_v55 = vld [vmem:[#allocation5 + $0x380] ss:$16 sps:$4 sm:$0xff]  }
  0xa4   :  { %1707 = vmatpush1.bf16.msra.mxu0 %v3740_v56  ;;  %1871 = vmatpush1.bf16.msra.mxu1 %v3741_v57  ;;  %v3831_v56 = vld [vmem:[#allocation5 + $0x388] ss:$16 sps:$4 sm:$0xff]   ;;  %v3836_v57 = vld [vmem:[#allocation5 + $0x3a4] ss:$16 sps:$4 sm:$0xff]  }
  0xa5   :  { %1708 = vmatprep.subr.bf16.mxu0 %v3742_v58  ;;  %1872 = vmatprep.subr.bf16.mxu1 %v3744_v59  ;;  %v3839_v58 = vld [vmem:[#allocation5 + $0x3ac] ss:$16 sps:$4 sm:$0xff]   ;;  %v3834_v59 = vld [vmem:[#allocation5 + $0x3a0] ss:$16 sps:$4 sm:$0xff]  }
  0xa8   :  { %1709 = vmatpush1.bf16.msra.mxu0 %v3746_v60  ;;  %1873 = vmatpush1.bf16.msra.mxu1 %v3747_v61  ;;  %v3837_v60 = vld [vmem:[#allocation5 + $0x3a8] ss:$16 sps:$4 sm:$0xff]   ;;  %v3842_v61 = vld [vmem:[#allocation5 + $0x3c4] ss:$16 sps:$4 sm:$0xff]  }
  0xa9   :  { %1710 = vmatprep.subr.bf16.mxu0 %v3748_v62  ;;  %1874 = vmatprep.subr.bf16.mxu1 %v3750_v63  ;;  %v3845_v62 = vld [vmem:[#allocation5 + $0x3cc] ss:$16 sps:$4 sm:$0xff]   ;;  %v3840_v63 = vld [vmem:[#allocation5 + $0x3c0] ss:$16 sps:$4 sm:$0xff]  }
  0xac   :  { %1711 = vmatpush1.bf16.msra.mxu0 %v3752_v0  ;;  %1875 = vmatpush1.bf16.msra.mxu1 %v3753_v1  ;;  %v3843_v0 = vld [vmem:[#allocation5 + $0x3c8] ss:$16 sps:$4 sm:$0xff]   ;;  %v3848_v1 = vld [vmem:[#allocation5 + $0x3e4] ss:$16 sps:$4 sm:$0xff]  }
  0xad   :  { %1721 = vmatprep.subr.bf16.mxu0 %v3758_v2  ;;  %1885 = vmatprep.subr.bf16.mxu1 %v3761_v3  ;;  %v3851_v2 = vld [vmem:[#allocation5 + $0x3ec] ss:$16 sps:$4 sm:$0xff]   ;;  %v3846_v3 = vld [vmem:[#allocation5 + $0x3e0] ss:$16 sps:$4 sm:$0xff]  }
  0xaf   :  { %1713 = vmatmul.mubr.bf16.vlgmr.msra.gmra.mrb[0].mxu0 %v3203_v4  ;;  %1877 = vmatmul.mubr.bf16.vlgmr.msra.gmra.mrb[0].mxu1 %v3203_v4  ;;  %v3849_v4 = vld [vmem:[#allocation5 + $0x3e8] ss:$16 sps:$4 sm:$0xff]  }
  0xb0   :  { %1722 = vmatpush1.bf16.msra.mxu0 %v3756_v5  ;;  %1886 = vmatpush1.bf16.msra.mxu1 %v3759_v6  ;;  %v3856_v5 = vld [vmem:[#allocation5 + $0x404] ss:$16 sps:$4 sm:$0xff]   ;;  %v3859_v6 = vld [vmem:[#allocation5 + $0x40c] ss:$16 sps:$4 sm:$0xff]  }
  0xb1   :  { %1723 = vmatprep.subr.bf16.mxu0 %v3764_v7  ;;  %1887 = vmatprep.subr.bf16.mxu1 %v3767_v8  ;;  %v3205_v7 = vcombine.low %v4520_v29, %v4520_v29  ;;  %v3854_v8 = vld [vmem:[#allocation5 + $0x400] ss:$16 sps:$4 sm:$0xff]   ;;  %v3889_v29 = vld [vmem:[#allocation5 + $0x4ac] ss:$16 sps:$4 sm:$0xff]  }
  0xb2   :  { %1753 = vmatprep.mubr.bf16.mxu0 %v3206_v30  ;;  %1917 = vmatprep.mubr.bf16.mxu1 %v3206_v30  ;;  %v3884_v30 = vld [vmem:[#allocation5 + $0x4a0] ss:$16 sps:$4 sm:$0xff]  }
  0xb4   :  { %1724 = vmatpush1.bf16.msra.mxu0 %v3762_v9  ;;  %1888 = vmatpush1.bf16.msra.mxu1 %v3765_v10  ;;  %v3857_v9 = vld [vmem:[#allocation5 + $0x408] ss:$16 sps:$4 sm:$0xff]   ;;  %v3862_v10 = vld [vmem:[#allocation5 + $0x424] ss:$16 sps:$4 sm:$0xff]  }
  0xb5   :  { %1725 = vmatprep.subr.bf16.mxu0 %v3770_v11  ;;  %1889 = vmatprep.subr.bf16.mxu1 %v3773_v12  ;;  %v4526_v11 = vld [vmem:[#allocation2 + $0x10] sm:$0xff]  ;;  %v3865_v12 = vld [vmem:[#allocation5 + $0x42c] ss:$16 sps:$4 sm:$0xff]  }
  0xb8   :  { %1726 = vmatpush1.bf16.msra.mxu0 %v3768_v13  ;;  %1890 = vmatpush1.bf16.msra.mxu1 %v3771_v14  ;;  %v3208_v13 = vcombine.high %v4526_v11, %v4526_v11  ;;  %v3860_v14 = vld [vmem:[#allocation5 + $0x420] ss:$16 sps:$4 sm:$0xff]  }
  0xb9   :  { %1727 = vmatprep.subr.bf16.mxu0 %v3776_v15  ;;  %1891 = vmatprep.subr.bf16.mxu1 %v3779_v16  ;;  %v3863_v15 = vld [vmem:[#allocation5 + $0x428] ss:$16 sps:$4 sm:$0xff]   ;;  %v3868_v16 = vld [vmem:[#allocation5 + $0x444] ss:$16 sps:$4 sm:$0xff]  }
  0xbc   :  { %1728 = vmatpush1.bf16.msra.mxu0 %v3774_v17  ;;  %1892 = vmatpush1.bf16.msra.mxu1 %v3777_v18  ;;  %v3871_v17 = vld [vmem:[#allocation5 + $0x44c] ss:$16 sps:$4 sm:$0xff]   ;;  %v3866_v18 = vld [vmem:[#allocation5 + $0x440] ss:$16 sps:$4 sm:$0xff]  }
  0xbd   :  { %1729 = vmatprep.subr.bf16.mxu0 %v3782_v19  ;;  %1893 = vmatprep.subr.bf16.mxu1 %v3785_v20  ;;  %v3869_v19 = vld [vmem:[#allocation5 + $0x448] ss:$16 sps:$4 sm:$0xff]   ;;  %v3874_v20 = vld [vmem:[#allocation5 + $0x464] ss:$16 sps:$4 sm:$0xff]  }
  0xc0   :  { %1730 = vmatpush1.bf16.msra.mxu0 %v3780_v21  ;;  %1894 = vmatpush1.bf16.msra.mxu1 %v3783_v22  ;;  %v3877_v21 = vld [vmem:[#allocation5 + $0x46c] ss:$16 sps:$4 sm:$0xff]   ;;  %v3872_v22 = vld [vmem:[#allocation5 + $0x460] ss:$16 sps:$4 sm:$0xff]  }
  0xc1   :  { %1731 = vmatprep.subr.bf16.mxu0 %v3788_v23  ;;  %1895 = vmatprep.subr.bf16.mxu1 %v3791_v24  ;;  %v3875_v23 = vld [vmem:[#allocation5 + $0x468] ss:$16 sps:$4 sm:$0xff]   ;;  %v3880_v24 = vld [vmem:[#allocation5 + $0x484] ss:$16 sps:$4 sm:$0xff]  }
  0xc4   :  { %1732 = vmatpush1.bf16.msra.mxu0 %v3786_v25  ;;  %1896 = vmatpush1.bf16.msra.mxu1 %v3789_v26  ;;  %v3883_v25 = vld [vmem:[#allocation5 + $0x48c] ss:$16 sps:$4 sm:$0xff]   ;;  %v3878_v26 = vld [vmem:[#allocation5 + $0x480] ss:$16 sps:$4 sm:$0xff]  }
  0xc5   :  { %1733 = vmatprep.subr.bf16.mxu0 %v3794_v27  ;;  %1897 = vmatprep.subr.bf16.mxu1 %v3797_v28  ;;  %v3881_v27 = vld [vmem:[#allocation5 + $0x488] ss:$16 sps:$4 sm:$0xff]   ;;  %v3886_v28 = vld [vmem:[#allocation5 + $0x4a4] ss:$16 sps:$4 sm:$0xff]  }
  0xc8   :  { %1734 = vmatpush1.bf16.msra.mxu0 %v3792_v31  ;;  %1898 = vmatpush1.bf16.msra.mxu1 %v3795_v32  ;;  %v3887_v31 = vld [vmem:[#allocation5 + $0x4a8] ss:$16 sps:$4 sm:$0xff]   ;;  %v3892_v32 = vld [vmem:[#allocation5 + $0x4c4] ss:$16 sps:$4 sm:$0xff]  }
  0xc9   :  { %1735 = vmatprep.subr.bf16.mxu0 %v3800_v33  ;;  %1899 = vmatprep.subr.bf16.mxu1 %v3803_v34  ;;  %v3895_v33 = vld [vmem:[#allocation5 + $0x4cc] ss:$16 sps:$4 sm:$0xff]   ;;  %v3890_v34 = vld [vmem:[#allocation5 + $0x4c0] ss:$16 sps:$4 sm:$0xff]  }
  0xcc   :  { %1736 = vmatpush1.bf16.msra.mxu0 %v3798_v35  ;;  %1900 = vmatpush1.bf16.msra.mxu1 %v3801_v36  ;;  %v3893_v35 = vld [vmem:[#allocation5 + $0x4c8] ss:$16 sps:$4 sm:$0xff]   ;;  %v3898_v36 = vld [vmem:[#allocation5 + $0x4e4] ss:$16 sps:$4 sm:$0xff]  }
  0xcd   :  { %1737 = vmatprep.subr.bf16.mxu0 %v3806_v37  ;;  %1901 = vmatprep.subr.bf16.mxu1 %v3809_v38  ;;  %v3901_v37 = vld [vmem:[#allocation5 + $0x4ec] ss:$16 sps:$4 sm:$0xff]   ;;  %v3896_v38 = vld [vmem:[#allocation5 + $0x4e0] ss:$16 sps:$4 sm:$0xff]  }
  0xd0   :  { %1738 = vmatpush1.bf16.msra.mxu0 %v3804_v39  ;;  %1902 = vmatpush1.bf16.msra.mxu1 %v3807_v40  ;;  %v3899_v39 = vld [vmem:[#allocation5 + $0x4e8] ss:$16 sps:$4 sm:$0xff]   ;;  %v3904_v40 = vld [vmem:[#allocation5 + $0x504] ss:$16 sps:$4 sm:$0xff]  }
  0xd1   :  { %1739 = vmatprep.subr.bf16.mxu0 %v3812_v41  ;;  %1903 = vmatprep.subr.bf16.mxu1 %v3815_v42  ;;  %v3907_v41 = vld [vmem:[#allocation5 + $0x50c] ss:$16 sps:$4 sm:$0xff]   ;;  %v3902_v42 = vld [vmem:[#allocation5 + $0x500] ss:$16 sps:$4 sm:$0xff]  }
  0xd4   :  { %1740 = vmatpush1.bf16.msra.mxu0 %v3810_v43  ;;  %1904 = vmatpush1.bf16.msra.mxu1 %v3813_v44  ;;  %v3905_v43 = vld [vmem:[#allocation5 + $0x508] ss:$16 sps:$4 sm:$0xff]   ;;  %v3910_v44 = vld [vmem:[#allocation5 + $0x524] ss:$16 sps:$4 sm:$0xff]  }
  0xd5   :  { %1741 = vmatprep.subr.bf16.mxu0 %v3818_v45  ;;  %1905 = vmatprep.subr.bf16.mxu1 %v3821_v46  ;;  %v3913_v45 = vld [vmem:[#allocation5 + $0x52c] ss:$16 sps:$4 sm:$0xff]   ;;  %v3908_v46 = vld [vmem:[#allocation5 + $0x520] ss:$16 sps:$4 sm:$0xff]  }
  0xd8   :  { %1742 = vmatpush1.bf16.msra.mxu0 %v3816_v47  ;;  %1906 = vmatpush1.bf16.msra.mxu1 %v3819_v48  ;;  %v3911_v47 = vld [vmem:[#allocation5 + $0x528] ss:$16 sps:$4 sm:$0xff]   ;;  %v3916_v48 = vld [vmem:[#allocation5 + $0x544] ss:$16 sps:$4 sm:$0xff]  }
  0xd9   :  { %1743 = vmatprep.subr.bf16.mxu0 %v3824_v49  ;;  %1907 = vmatprep.subr.bf16.mxu1 %v3827_v50  ;;  %v3919_v49 = vld [vmem:[#allocation5 + $0x54c] ss:$16 sps:$4 sm:$0xff]   ;;  %v3914_v50 = vld [vmem:[#allocation5 + $0x540] ss:$16 sps:$4 sm:$0xff]  }
  0xdc   :  { %1744 = vmatpush1.bf16.msra.mxu0 %v3822_v51  ;;  %1908 = vmatpush1.bf16.msra.mxu1 %v3825_v52  ;;  %v3917_v51 = vld [vmem:[#allocation5 + $0x548] ss:$16 sps:$4 sm:$0xff]   ;;  %v3922_v52 = vld [vmem:[#allocation5 + $0x564] ss:$16 sps:$4 sm:$0xff]  }
  0xdd   :  { %1745 = vmatprep.subr.bf16.mxu0 %v3830_v53  ;;  %1909 = vmatprep.subr.bf16.mxu1 %v3833_v54  ;;  %v3925_v53 = vld [vmem:[#allocation5 + $0x56c] ss:$16 sps:$4 sm:$0xff]   ;;  %v3920_v54 = vld [vmem:[#allocation5 + $0x560] ss:$16 sps:$4 sm:$0xff]  }
  0xe0   :  { %1746 = vmatpush1.bf16.msra.mxu0 %v3828_v55  ;;  %1910 = vmatpush1.bf16.msra.mxu1 %v3831_v56  ;;  %v3923_v55 = vld [vmem:[#allocation5 + $0x568] ss:$16 sps:$4 sm:$0xff]   ;;  %v3928_v56 = vld [vmem:[#allocation5 + $0x584] ss:$16 sps:$4 sm:$0xff]  }
  0xe1   :  { %1747 = vmatprep.subr.bf16.mxu0 %v3836_v57  ;;  %1911 = vmatprep.subr.bf16.mxu1 %v3839_v58  ;;  %v3931_v57 = vld [vmem:[#allocation5 + $0x58c] ss:$16 sps:$4 sm:$0xff]   ;;  %v3926_v58 = vld [vmem:[#allocation5 + $0x580] ss:$16 sps:$4 sm:$0xff]  }
  0xe4   :  { %1748 = vmatpush1.bf16.msra.mxu0 %v3834_v59  ;;  %1912 = vmatpush1.bf16.msra.mxu1 %v3837_v60  ;;  %v3929_v59 = vld [vmem:[#allocation5 + $0x588] ss:$16 sps:$4 sm:$0xff]   ;;  %v3934_v60 = vld [vmem:[#allocation5 + $0x5a4] ss:$16 sps:$4 sm:$0xff]  }
  0xe5   :  { %1749 = vmatprep.subr.bf16.mxu0 %v3842_v61  ;;  %1913 = vmatprep.subr.bf16.mxu1 %v3845_v62  ;;  %v3937_v61 = vld [vmem:[#allocation5 + $0x5ac] ss:$16 sps:$4 sm:$0xff]   ;;  %v3932_v62 = vld [vmem:[#allocation5 + $0x5a0] ss:$16 sps:$4 sm:$0xff]  }
  0xe8   :  { %1750 = vmatpush1.bf16.msra.mxu0 %v3840_v63  ;;  %1914 = vmatpush1.bf16.msra.mxu1 %v3843_v0  ;;  %v3935_v63 = vld [vmem:[#allocation5 + $0x5a8] ss:$16 sps:$4 sm:$0xff]   ;;  %v3940_v0 = vld [vmem:[#allocation5 + $0x5c4] ss:$16 sps:$4 sm:$0xff]  }
  0xe9   :  { %1751 = vmatprep.subr.bf16.mxu0 %v3848_v1  ;;  %1915 = vmatprep.subr.bf16.mxu1 %v3851_v2  ;;  %v3943_v1 = vld [vmem:[#allocation5 + $0x5cc] ss:$16 sps:$4 sm:$0xff]   ;;  %v3938_v2 = vld [vmem:[#allocation5 + $0x5c0] ss:$16 sps:$4 sm:$0xff]  }
  0xec   :  { %1752 = vmatpush1.bf16.msra.mxu0 %v3846_v3  ;;  %1916 = vmatpush1.bf16.msra.mxu1 %v3849_v4  ;;  %v3941_v3 = vld [vmem:[#allocation5 + $0x5c8] ss:$16 sps:$4 sm:$0xff]   ;;  %v3946_v4 = vld [vmem:[#allocation5 + $0x5e4] ss:$16 sps:$4 sm:$0xff]  }
  0xed   :  { %1762 = vmatprep.subr.bf16.mxu0 %v3856_v5  ;;  %1926 = vmatprep.subr.bf16.mxu1 %v3859_v6  ;;  %v3949_v5 = vld [vmem:[#allocation5 + $0x5ec] ss:$16 sps:$4 sm:$0xff]   ;;  %v3944_v6 = vld [vmem:[#allocation5 + $0x5e0] ss:$16 sps:$4 sm:$0xff]  }
  0xef   :  { %1754 = vmatmul.mubr.bf16.vlgmr.msra.gmra.mrb[0].mxu0 %v3205_v7  ;;  %1918 = vmatmul.mubr.bf16.vlgmr.msra.gmra.mrb[0].mxu1 %v3205_v7  ;;  %v3947_v7 = vld [vmem:[#allocation5 + $0x5e8] ss:$16 sps:$4 sm:$0xff]  }
  0xf0   :  { %1763 = vmatpush1.bf16.msra.mxu0 %v3854_v8  ;;  %1927 = vmatpush1.bf16.msra.mxu1 %v3857_v9  ;;  %v3954_v8 = vld [vmem:[#allocation5 + $0x604] ss:$16 sps:$4 sm:$0xff]   ;;  %v3957_v9 = vld [vmem:[#allocation5 + $0x60c] ss:$16 sps:$4 sm:$0xff]  }
  0xf1   :  { %1764 = vmatprep.subr.bf16.mxu0 %v3862_v10  ;;  %1928 = vmatprep.subr.bf16.mxu1 %v3865_v12  ;;  %v4530_v10 = vld [vmem:[#allocation2 + $0x18] sm:$0xff]  ;;  %v3952_v12 = vld [vmem:[#allocation5 + $0x600] ss:$16 sps:$4 sm:$0xff]  }
  0xf2   :  { %1794 = vmatprep.mubr.bf16.mxu0 %v3208_v13  ;;  %1958 = vmatprep.mubr.bf16.mxu1 %v3208_v13  ;;  %v3955_v13 = vld [vmem:[#allocation5 + $0x608] ss:$16 sps:$4 sm:$0xff]  }
  0xf4   :  { %1765 = vmatpush1.bf16.msra.mxu0 %v3860_v14  ;;  %1929 = vmatpush1.bf16.msra.mxu1 %v3863_v15  ;;  %v3207_v14 = vcombine.low %v4526_v11, %v4526_v11  ;;  %v3960_v15 = vld [vmem:[#allocation5 + $0x624] ss:$16 sps:$4 sm:$0xff]   ;;  %v3964_v11 = vld [vmem:[#allocation5 + $0x640] ss:$16 sps:$4 sm:$0xff]  }
  0xf5   :  { %1766 = vmatprep.subr.bf16.mxu0 %v3868_v16  ;;  %1930 = vmatprep.subr.bf16.mxu1 %v3871_v17  ;;  %v3963_v16 = vld [vmem:[#allocation5 + $0x62c] ss:$16 sps:$4 sm:$0xff]   ;;  %v3958_v17 = vld [vmem:[#allocation5 + $0x620] ss:$16 sps:$4 sm:$0xff]  }
  0xf8   :  { %1767 = vmatpush1.bf16.msra.mxu0 %v3866_v18  ;;  %1931 = vmatpush1.bf16.msra.mxu1 %v3869_v19  ;;  %v3961_v18 = vld [vmem:[#allocation5 + $0x628] ss:$16 sps:$4 sm:$0xff]   ;;  %v3210_v19 = vcombine.high %v4530_v10, %v4530_v10 }
  0xf9   :  { %1768 = vmatprep.subr.bf16.mxu0 %v3874_v20  ;;  %1932 = vmatprep.subr.bf16.mxu1 %v3877_v21  ;;  %v3966_v20 = vld [vmem:[#allocation5 + $0x644] ss:$16 sps:$4 sm:$0xff]   ;;  %v3969_v21 = vld [vmem:[#allocation5 + $0x64c] ss:$16 sps:$4 sm:$0xff]  }
  0xfc   :  { %1769 = vmatpush1.bf16.msra.mxu0 %v3872_v22  ;;  %1933 = vmatpush1.bf16.msra.mxu1 %v3875_v23  ;;  %v3967_v22 = vld [vmem:[#allocation5 + $0x648] ss:$16 sps:$4 sm:$0xff]   ;;  %v3972_v23 = vld [vmem:[#allocation5 + $0x664] ss:$16 sps:$4 sm:$0xff]  }
  0xfd   :  { %1770 = vmatprep.subr.bf16.mxu0 %v3880_v24  ;;  %1934 = vmatprep.subr.bf16.mxu1 %v3883_v25  ;;  %v3975_v24 = vld [vmem:[#allocation5 + $0x66c] ss:$16 sps:$4 sm:$0xff]   ;;  %v3970_v25 = vld [vmem:[#allocation5 + $0x660] ss:$16 sps:$4 sm:$0xff]  }
 0x100   :  { %1771 = vmatpush1.bf16.msra.mxu0 %v3878_v26  ;;  %1935 = vmatpush1.bf16.msra.mxu1 %v3881_v27  ;;  %v3973_v26 = vld [vmem:[#allocation5 + $0x668] ss:$16 sps:$4 sm:$0xff]   ;;  %v3978_v27 = vld [vmem:[#allocation5 + $0x684] ss:$16 sps:$4 sm:$0xff]  }
 0x101   :  { %1772 = vmatprep.subr.bf16.mxu0 %v3886_v28  ;;  %1936 = vmatprep.subr.bf16.mxu1 %v3889_v29  ;;  %v3981_v28 = vld [vmem:[#allocation5 + $0x68c] ss:$16 sps:$4 sm:$0xff]   ;;  %v3976_v29 = vld [vmem:[#allocation5 + $0x680] ss:$16 sps:$4 sm:$0xff]  }
 0x104   :  { %1773 = vmatpush1.bf16.msra.mxu0 %v3884_v30  ;;  %1937 = vmatpush1.bf16.msra.mxu1 %v3887_v31  ;;  %v3979_v30 = vld [vmem:[#allocation5 + $0x688] ss:$16 sps:$4 sm:$0xff]   ;;  %v3984_v31 = vld [vmem:[#allocation5 + $0x6a4] ss:$16 sps:$4 sm:$0xff]  }
 0x105   :  { %1774 = vmatprep.subr.bf16.mxu0 %v3892_v32  ;;  %1938 = vmatprep.subr.bf16.mxu1 %v3895_v33  ;;  %v3987_v32 = vld [vmem:[#allocation5 + $0x6ac] ss:$16 sps:$4 sm:$0xff]   ;;  %v3982_v33 = vld [vmem:[#allocation5 + $0x6a0] ss:$16 sps:$4 sm:$0xff]  }
 0x108   :  { %1775 = vmatpush1.bf16.msra.mxu0 %v3890_v34  ;;  %1939 = vmatpush1.bf16.msra.mxu1 %v3893_v35  ;;  %v3985_v34 = vld [vmem:[#allocation5 + $0x6a8] ss:$16 sps:$4 sm:$0xff]   ;;  %v3990_v35 = vld [vmem:[#allocation5 + $0x6c4] ss:$16 sps:$4 sm:$0xff]  }
 0x109   :  { %1776 = vmatprep.subr.bf16.mxu0 %v3898_v36  ;;  %1940 = vmatprep.subr.bf16.mxu1 %v3901_v37  ;;  %v3993_v36 = vld [vmem:[#allocation5 + $0x6cc] ss:$16 sps:$4 sm:$0xff]   ;;  %v3988_v37 = vld [vmem:[#allocation5 + $0x6c0] ss:$16 sps:$4 sm:$0xff]  }
 0x10c   :  { %1777 = vmatpush1.bf16.msra.mxu0 %v3896_v38  ;;  %1941 = vmatpush1.bf16.msra.mxu1 %v3899_v39  ;;  %v3991_v38 = vld [vmem:[#allocation5 + $0x6c8] ss:$16 sps:$4 sm:$0xff]   ;;  %v3996_v39 = vld [vmem:[#allocation5 + $0x6e4] ss:$16 sps:$4 sm:$0xff]  }
 0x10d   :  { %1778 = vmatprep.subr.bf16.mxu0 %v3904_v40  ;;  %1942 = vmatprep.subr.bf16.mxu1 %v3907_v41  ;;  %v3999_v40 = vld [vmem:[#allocation5 + $0x6ec] ss:$16 sps:$4 sm:$0xff]   ;;  %v3994_v41 = vld [vmem:[#allocation5 + $0x6e0] ss:$16 sps:$4 sm:$0xff]  }
 0x110   :  { %1779 = vmatpush1.bf16.msra.mxu0 %v3902_v42  ;;  %1943 = vmatpush1.bf16.msra.mxu1 %v3905_v43  ;;  %v3997_v42 = vld [vmem:[#allocation5 + $0x6e8] ss:$16 sps:$4 sm:$0xff]   ;;  %v4002_v43 = vld [vmem:[#allocation5 + $0x704] ss:$16 sps:$4 sm:$0xff]  }
 0x111   :  { %1780 = vmatprep.subr.bf16.mxu0 %v3910_v44  ;;  %1944 = vmatprep.subr.bf16.mxu1 %v3913_v45  ;;  %v4005_v44 = vld [vmem:[#allocation5 + $0x70c] ss:$16 sps:$4 sm:$0xff]   ;;  %v4000_v45 = vld [vmem:[#allocation5 + $0x700] ss:$16 sps:$4 sm:$0xff]  }
 0x114   :  { %1781 = vmatpush1.bf16.msra.mxu0 %v3908_v46  ;;  %1945 = vmatpush1.bf16.msra.mxu1 %v3911_v47  ;;  %v4003_v46 = vld [vmem:[#allocation5 + $0x708] ss:$16 sps:$4 sm:$0xff]   ;;  %v4008_v47 = vld [vmem:[#allocation5 + $0x724] ss:$16 sps:$4 sm:$0xff]  }
 0x115   :  { %1782 = vmatprep.subr.bf16.mxu0 %v3916_v48  ;;  %1946 = vmatprep.subr.bf16.mxu1 %v3919_v49  ;;  %v4011_v48 = vld [vmem:[#allocation5 + $0x72c] ss:$16 sps:$4 sm:$0xff]   ;;  %v4006_v49 = vld [vmem:[#allocation5 + $0x720] ss:$16 sps:$4 sm:$0xff]  }
 0x118   :  { %1783 = vmatpush1.bf16.msra.mxu0 %v3914_v50  ;;  %1947 = vmatpush1.bf16.msra.mxu1 %v3917_v51  ;;  %v4009_v50 = vld [vmem:[#allocation5 + $0x728] ss:$16 sps:$4 sm:$0xff]   ;;  %v4014_v51 = vld [vmem:[#allocation5 + $0x744] ss:$16 sps:$4 sm:$0xff]  }
 0x119   :  { %1784 = vmatprep.subr.bf16.mxu0 %v3922_v52  ;;  %1948 = vmatprep.subr.bf16.mxu1 %v3925_v53  ;;  %v4017_v52 = vld [vmem:[#allocation5 + $0x74c] ss:$16 sps:$4 sm:$0xff]   ;;  %v4012_v53 = vld [vmem:[#allocation5 + $0x740] ss:$16 sps:$4 sm:$0xff]  }
 0x11c   :  { %1785 = vmatpush1.bf16.msra.mxu0 %v3920_v54  ;;  %1949 = vmatpush1.bf16.msra.mxu1 %v3923_v55  ;;  %v4015_v54 = vld [vmem:[#allocation5 + $0x748] ss:$16 sps:$4 sm:$0xff]   ;;  %v4020_v55 = vld [vmem:[#allocation5 + $0x764] ss:$16 sps:$4 sm:$0xff]  }
 0x11d   :  { %1786 = vmatprep.subr.bf16.mxu0 %v3928_v56  ;;  %1950 = vmatprep.subr.bf16.mxu1 %v3931_v57  ;;  %v4023_v56 = vld [vmem:[#allocation5 + $0x76c] ss:$16 sps:$4 sm:$0xff]   ;;  %v4018_v57 = vld [vmem:[#allocation5 + $0x760] ss:$16 sps:$4 sm:$0xff]  }
 0x120   :  { %1787 = vmatpush1.bf16.msra.mxu0 %v3926_v58  ;;  %1951 = vmatpush1.bf16.msra.mxu1 %v3929_v59  ;;  %v4021_v58 = vld [vmem:[#allocation5 + $0x768] ss:$16 sps:$4 sm:$0xff]   ;;  %v4026_v59 = vld [vmem:[#allocation5 + $0x784] ss:$16 sps:$4 sm:$0xff]  }
 0x121   :  { %1788 = vmatprep.subr.bf16.mxu0 %v3934_v60  ;;  %1952 = vmatprep.subr.bf16.mxu1 %v3937_v61  ;;  %v4029_v60 = vld [vmem:[#allocation5 + $0x78c] ss:$16 sps:$4 sm:$0xff]   ;;  %v4024_v61 = vld [vmem:[#allocation5 + $0x780] ss:$16 sps:$4 sm:$0xff]  }
 0x124   :  { %1789 = vmatpush1.bf16.msra.mxu0 %v3932_v62  ;;  %1953 = vmatpush1.bf16.msra.mxu1 %v3935_v63  ;;  %v4027_v62 = vld [vmem:[#allocation5 + $0x788] ss:$16 sps:$4 sm:$0xff]   ;;  %v4032_v63 = vld [vmem:[#allocation5 + $0x7a4] ss:$16 sps:$4 sm:$0xff]  }
 0x125   :  { %1790 = vmatprep.subr.bf16.mxu0 %v3940_v0  ;;  %1954 = vmatprep.subr.bf16.mxu1 %v3943_v1  ;;  %v4035_v0 = vld [vmem:[#allocation5 + $0x7ac] ss:$16 sps:$4 sm:$0xff]   ;;  %v4030_v1 = vld [vmem:[#allocation5 + $0x7a0] ss:$16 sps:$4 sm:$0xff]  }
 0x128   :  { %1791 = vmatpush1.bf16.msra.mxu0 %v3938_v2  ;;  %1955 = vmatpush1.bf16.msra.mxu1 %v3941_v3  ;;  %v4033_v2 = vld [vmem:[#allocation5 + $0x7a8] ss:$16 sps:$4 sm:$0xff]   ;;  %v4038_v3 = vld [vmem:[#allocation5 + $0x7c4] ss:$16 sps:$4 sm:$0xff]  }
 0x129   :  { %1792 = vmatprep.subr.bf16.mxu0 %v3946_v4  ;;  %1956 = vmatprep.subr.bf16.mxu1 %v3949_v5  ;;  %v4041_v4 = vld [vmem:[#allocation5 + $0x7cc] ss:$16 sps:$4 sm:$0xff]   ;;  %v4036_v5 = vld [vmem:[#allocation5 + $0x7c0] ss:$16 sps:$4 sm:$0xff]  }
 0x12c   :  { %1793 = vmatpush1.bf16.msra.mxu0 %v3944_v6  ;;  %1957 = vmatpush1.bf16.msra.mxu1 %v3947_v7  ;;  %v4039_v6 = vld [vmem:[#allocation5 + $0x7c8] ss:$16 sps:$4 sm:$0xff]   ;;  %v4044_v7 = vld [vmem:[#allocation5 + $0x7e4] ss:$16 sps:$4 sm:$0xff]  }
 0x12d   :  { %1803 = vmatprep.subr.bf16.mxu0 %v3954_v8  ;;  %1967 = vmatprep.subr.bf16.mxu1 %v3957_v9  ;;  %v4047_v8 = vld [vmem:[#allocation5 + $0x7ec] ss:$16 sps:$4 sm:$0xff]   ;;  %v4042_v9 = vld [vmem:[#allocation5 + $0x7e0] ss:$16 sps:$4 sm:$0xff]  }
 0x12f   :  { %1795 = vmatmul.mubr.bf16.vlgmr.msra.gmra.mrb[0].mxu0 %v3207_v14  ;;  %1959 = vmatmul.mubr.bf16.vlgmr.msra.gmra.mrb[0].mxu1 %v3207_v14  ;;  %v4052_v14 = vld [vmem:[#allocation8 + $0x4] ss:$8 sps:$4 sm:$0xff]  }
 0x130   :  { %1804 = vmatpush1.bf16.msra.mxu0 %v3952_v12  ;;  %1968 = vmatpush1.bf16.msra.mxu1 %v3955_v13  ;;  %v4045_v12 = vld [vmem:[#allocation5 + $0x7e8] ss:$16 sps:$4 sm:$0xff]   ;;  %v3209_v13 = vcombine.low %v4530_v10, %v4530_v10  ;;  %v4064_v10 = vld [vmem:[#allocation8 + $0x44] ss:$8 sps:$4 sm:$0xff]  }
 0x131   :  { %1805 = vmatprep.subr.bf16.mxu0 %v3960_v15  ;;  %1969 = vmatprep.subr.bf16.mxu1 %v3963_v16  ;;  %v4050_v15 = vld [vmem:[#allocation8] ss:$8 sps:$4 sm:$0xff]   ;;  %v4055_v16 = vld [vmem:[#allocation8 + $0x14] ss:$8 sps:$4 sm:$0xff]  }
 0x132   :  { %1835 = vmatprep.mubr.bf16.mxu0 %v3210_v19  ;;  %1999 = vmatprep.mubr.bf16.mxu1 %v3210_v19  ;;  %v4056_v19 = vld [vmem:[#allocation8 + $0x20] ss:$8 sps:$4 sm:$0xff]  }
 0x134   :  { %1806 = vmatpush1.bf16.msra.mxu0 %v3958_v17  ;;  %1970 = vmatpush1.bf16.msra.mxu1 %v3961_v18  ;;  %v4053_v17 = vld [vmem:[#allocation8 + $0x10] ss:$8 sps:$4 sm:$0xff]   ;;  %v4058_v18 = vld [vmem:[#allocation8 + $0x24] ss:$8 sps:$4 sm:$0xff]  }
 0x135   :  { %1807 = vmatprep.subr.bf16.mxu0 %v3966_v20  ;;  %1971 = vmatprep.subr.bf16.mxu1 %v3969_v21  ;;  %v4061_v20 = vld [vmem:[#allocation8 + $0x34] ss:$8 sps:$4 sm:$0xff]   ;;  %v4059_v21 = vld [vmem:[#allocation8 + $0x30] ss:$8 sps:$4 sm:$0xff]  }
 0x138   :  { %1808 = vmatpush1.bf16.msra.mxu0 %v3964_v11  ;;  %1972 = vmatpush1.bf16.msra.mxu1 %v3967_v22  ;;  %v4062_v11 = vld [vmem:[#allocation8 + $0x40] ss:$8 sps:$4 sm:$0xff]   ;;  %v4067_v22 = vld [vmem:[#allocation8 + $0x54] ss:$8 sps:$4 sm:$0xff]  }
 0x139   :  { %1809 = vmatprep.subr.bf16.mxu0 %v3972_v23  ;;  %1973 = vmatprep.subr.bf16.mxu1 %v3975_v24  ;;  %v4065_v23 = vld [vmem:[#allocation8 + $0x50] ss:$8 sps:$4 sm:$0xff]   ;;  %v4070_v24 = vld [vmem:[#allocation8 + $0x64] ss:$8 sps:$4 sm:$0xff]  }
 0x13c   :  { %1810 = vmatpush1.bf16.msra.mxu0 %v3970_v25  ;;  %1974 = vmatpush1.bf16.msra.mxu1 %v3973_v26  ;;  %v4068_v25 = vld [vmem:[#allocation8 + $0x60] ss:$8 sps:$4 sm:$0xff]   ;;  %v4073_v26 = vld [vmem:[#allocation8 + $0x74] ss:$8 sps:$4 sm:$0xff]  }
 0x13d   :  { %1811 = vmatprep.subr.bf16.mxu0 %v3978_v27  ;;  %1975 = vmatprep.subr.bf16.mxu1 %v3981_v28  ;;  %v4071_v27 = vld [vmem:[#allocation8 + $0x70] ss:$8 sps:$4 sm:$0xff]   ;;  %v4076_v28 = vld [vmem:[#allocation8 + $0x84] ss:$8 sps:$4 sm:$0xff]  }
 0x140   :  { %1812 = vmatpush1.bf16.msra.mxu0 %v3976_v29  ;;  %1976 = vmatpush1.bf16.msra.mxu1 %v3979_v30  ;;  %v4074_v29 = vld [vmem:[#allocation8 + $0x80] ss:$8 sps:$4 sm:$0xff]   ;;  %v4079_v30 = vld [vmem:[#allocation8 + $0x94] ss:$8 sps:$4 sm:$0xff]  }
 0x141   :  { %1813 = vmatprep.subr.bf16.mxu0 %v3984_v31  ;;  %1977 = vmatprep.subr.bf16.mxu1 %v3987_v32  ;;  %v4077_v31 = vld [vmem:[#allocation8 + $0x90] ss:$8 sps:$4 sm:$0xff]   ;;  %v4080_v32 = vld [vmem:[#allocation8 + $0xa0] ss:$8 sps:$4 sm:$0xff]  }
 0x144   :  { %1814 = vmatpush1.bf16.msra.mxu0 %v3982_v33  ;;  %1978 = vmatpush1.bf16.msra.mxu1 %v3985_v34  ;;  %v4082_v33 = vld [vmem:[#allocation8 + $0xa4] ss:$8 sps:$4 sm:$0xff]   ;;  %v4085_v34 = vld [vmem:[#allocation8 + $0xb4] ss:$8 sps:$4 sm:$0xff]  }
 0x145   :  { %1815 = vmatprep.subr.bf16.mxu0 %v3990_v35  ;;  %1979 = vmatprep.subr.bf16.mxu1 %v3993_v36  ;;  %v4083_v35 = vld [vmem:[#allocation8 + $0xb0] ss:$8 sps:$4 sm:$0xff]   ;;  %v4088_v36 = vld [vmem:[#allocation8 + $0xc4] ss:$8 sps:$4 sm:$0xff]  }
 0x148   :  { %1816 = vmatpush1.bf16.msra.mxu0 %v3988_v37  ;;  %1980 = vmatpush1.bf16.msra.mxu1 %v3991_v38  ;;  %v4086_v37 = vld [vmem:[#allocation8 + $0xc0] ss:$8 sps:$4 sm:$0xff]   ;;  %v4091_v38 = vld [vmem:[#allocation8 + $0xd4] ss:$8 sps:$4 sm:$0xff]  }
 0x149   :  { %1817 = vmatprep.subr.bf16.mxu0 %v3996_v39  ;;  %1981 = vmatprep.subr.bf16.mxu1 %v3999_v40  ;;  %v4089_v39 = vld [vmem:[#allocation8 + $0xd0] ss:$8 sps:$4 sm:$0xff]   ;;  %v4094_v40 = vld [vmem:[#allocation8 + $0xe4] ss:$8 sps:$4 sm:$0xff]  }
 0x14c   :  { %1818 = vmatpush1.bf16.msra.mxu0 %v3994_v41  ;;  %1982 = vmatpush1.bf16.msra.mxu1 %v3997_v42  ;;  %v4092_v41 = vld [vmem:[#allocation8 + $0xe0] ss:$8 sps:$4 sm:$0xff]   ;;  %v4097_v42 = vld [vmem:[#allocation8 + $0xf4] ss:$8 sps:$4 sm:$0xff]  }
 0x14d   :  { %1819 = vmatprep.subr.bf16.mxu0 %v4002_v43  ;;  %1983 = vmatprep.subr.bf16.mxu1 %v4005_v44  ;;  %v4095_v43 = vld [vmem:[#allocation8 + $0xf0] ss:$8 sps:$4 sm:$0xff]   ;;  %v4100_v44 = vld [vmem:[#allocation8 + $0x104] ss:$8 sps:$4 sm:$0xff]  }
 0x150   :  { %1820 = vmatpush1.bf16.msra.mxu0 %v4000_v45  ;;  %1984 = vmatpush1.bf16.msra.mxu1 %v4003_v46 }
 0x151   :  { %1821 = vmatprep.subr.bf16.mxu0 %v4008_v47  ;;  %1985 = vmatprep.subr.bf16.mxu1 %v4011_v48 }
 0x154   :  { %1822 = vmatpush1.bf16.msra.mxu0 %v4006_v49  ;;  %1986 = vmatpush1.bf16.msra.mxu1 %v4009_v50 }
 0x155   :  { %1823 = vmatprep.subr.bf16.mxu0 %v4014_v51  ;;  %1987 = vmatprep.subr.bf16.mxu1 %v4017_v52 }
 0x158   :  { %1824 = vmatpush1.bf16.msra.mxu0 %v4012_v53  ;;  %1988 = vmatpush1.bf16.msra.mxu1 %v4015_v54 }
 0x159   :  { %1825 = vmatprep.subr.bf16.mxu0 %v4020_v55  ;;  %1989 = vmatprep.subr.bf16.mxu1 %v4023_v56 }
 0x15c   :  { %1826 = vmatpush1.bf16.msra.mxu0 %v4018_v57  ;;  %1990 = vmatpush1.bf16.msra.mxu1 %v4021_v58 }
 0x15d   :  { %1827 = vmatprep.subr.bf16.mxu0 %v4026_v59  ;;  %1991 = vmatprep.subr.bf16.mxu1 %v4029_v60 }
 0x160   :  { %1828 = vmatpush1.bf16.msra.mxu0 %v4024_v61  ;;  %1992 = vmatpush1.bf16.msra.mxu1 %v4027_v62 }
 0x161   :  { %1829 = vmatprep.subr.bf16.mxu0 %v4032_v63  ;;  %1993 = vmatprep.subr.bf16.mxu1 %v4035_v0 }
 0x164   :  { %1830 = vmatpush1.bf16.msra.mxu0 %v4030_v1  ;;  %1994 = vmatpush1.bf16.msra.mxu1 %v4033_v2 }
 0x165   :  { %1831 = vmatprep.subr.bf16.mxu0 %v4038_v3  ;;  %1995 = vmatprep.subr.bf16.mxu1 %v4041_v4 }
 0x168   :  { %1832 = vmatpush1.bf16.msra.mxu0 %v4036_v5  ;;  %1996 = vmatpush1.bf16.msra.mxu1 %v4039_v6 }
 0x169   :  { %1833 = vmatprep.subr.bf16.mxu0 %v4044_v7  ;;  %1997 = vmatprep.subr.bf16.mxu1 %v4047_v8 }
 0x16c   :  { %1834 = vmatpush1.bf16.msra.mxu0 %v4042_v9  ;;  %1998 = vmatpush1.bf16.msra.mxu1 %v4045_v12 }
 0x16d   :  { %2627 = vmatprep.subr.bf16.mxu0 %v4052_v14 }
 0x16f   :  { %1836 = vmatmul.mubr.bf16.vlgmr.msra.gmra.mrb[0].mxu0 %v3209_v13  ;;  %2000 = vmatmul.mubr.bf16.vlgmr.msra.gmra.mrb[0].mxu1 %v3209_v13 }
 0x170   :  { %2628 = vmatpush1.bf16.msra.mxu0 %v4050_v15 }
 0x171   :  { %2629 = vmatprep.subr.bf16.mxu0 %v4055_v16 }
 0x174   :  { %2630 = vmatpush1.bf16.msra.mxu0 %v4053_v17 }
 0x175   :  { %2631 = vmatprep.subr.bf16.mxu0 %v4058_v18 }
 0x178   :  { %2632 = vmatpush1.bf16.msra.mxu0 %v4056_v19 }
 0x179   :  { %2633 = vmatprep.subr.bf16.mxu0 %v4061_v20 }
 0x17c   :  { %2634 = vmatpush1.bf16.msra.mxu0 %v4059_v21 }
 0x17d   :  { %2635 = vmatprep.subr.bf16.mxu0 %v4064_v10 }
 0x180   :  { %2636 = vmatpush1.bf16.msra.mxu0 %v4062_v11 }
 0x181   :  { %2637 = vmatprep.subr.bf16.mxu0 %v4067_v22 }
 0x184   :  { %2638 = vmatpush1.bf16.msra.mxu0 %v4065_v23 }
 0x185   :  { %2639 = vmatprep.subr.bf16.mxu0 %v4070_v24 }
 0x188   :  { %2640 = vmatpush1.bf16.msra.mxu0 %v4068_v25 }
 0x189   :  { %2641 = vmatprep.subr.bf16.mxu0 %v4073_v26 }
 0x18c   :  { %2642 = vmatpush1.bf16.msra.mxu0 %v4071_v27 }
 0x18d   :  { %2643 = vmatprep.subr.bf16.mxu0 %v4076_v28 }
 0x190   :  { %2644 = vmatpush1.bf16.msra.mxu0 %v4074_v29 }
 0x191   :  { %2645 = vmatprep.subr.bf16.mxu0 %v4079_v30 }
 0x194   :  { %2646 = vmatpush1.bf16.msra.mxu0 %v4077_v31 }
 0x195   :  { %2647 = vmatprep.subr.bf16.mxu0 %v4082_v33 }
 0x198   :  { %2648 = vmatpush1.bf16.msra.mxu0 %v4080_v32 }
 0x199   :  { %2649 = vmatprep.subr.bf16.mxu0 %v4085_v34 }
 0x19c   :  { %2650 = vmatpush1.bf16.msra.mxu0 %v4083_v35 }
 0x19d   :  { %2651 = vmatprep.subr.bf16.mxu0 %v4088_v36 }
 0x1a0   :  { %2652 = vmatpush1.bf16.msra.mxu0 %v4086_v37 }
 0x1a1   :  { %2653 = vmatprep.subr.bf16.mxu0 %v4091_v38 }
 0x1a4   :  { %2654 = vmatpush1.bf16.msra.mxu0 %v4089_v39 }
 0x1a5   :  { %2655 = vmatprep.subr.bf16.mxu0 %v4094_v40 }
 0x1a8   :  { %2656 = vmatpush1.bf16.msra.mxu0 %v4092_v41 }
 0x1a9   :  { %2657 = vmatprep.subr.bf16.mxu0 %v4097_v42 }
 0x1ac   :  { %2658 = vmatpush1.bf16.msra.mxu0 %v4095_v43 }
 0x1ad   :  { %2668 = vmatprep.subr.bf16.mxu0 %v4100_v44 }
 0x242   :  { %v4538_v45 = vpop.f32.mrb[0].mxu0  ;;  %v4540_v46 = vpop.f32.mrb[0].mxu1 }
 0x243   :  { %v2009_v47 = vrot.slane %v4538_v45, 4  ;;  %v2021_v48 = vrot.slane %v4540_v46, 4  ;;  %v4544_v49 = vpop.f32.mrb[1].mxu0  ;;  %v4546_v50 = vpop.f32.mrb[1].mxu1 }
 0x244   :  { %v2015_v51 = vrot.slane %v4544_v49, 4  ;;  %v2027_v52 = vrot.slane %v4546_v50, 4  ;;  %v1841_v53 = vpop.f32.mrb[2].mxu0  ;;  %v2005_v54 = vpop.f32.mrb[2].mxu1 }
 0x245   :  { %v2010_v55 = vadd.f32 %v2009_v47, %v4538_v45  ;;  %v2022_v56 = vadd.f32 %v2021_v48, %v4540_v46  ;;  %v1842_v57 = vpop.f32.mrb[3].mxu0  ;;  %v2006_v58 = vpop.f32.mrb[3].mxu1 }
 0x246   :  { %v2016_v59 = vadd.f32 %v2015_v51, %v4544_v49  ;;  %v2028_v60 = vadd.f32 %v2027_v52, %v4546_v50 }
 0x247   :  { %v2011_v61 = vrot.slane %v2010_v55, 2  ;;  %v2023_v62 = vrot.slane %v2022_v56, 2 }
 0x248   :  { %v2017_v63 = vrot.slane %v2016_v59, 2  ;;  %v2029_v0 = vrot.slane %v2028_v60, 2 }
 0x249   :  { %v2012_v1 = vadd.f32 %v2011_v61, %v2010_v55  ;;  %v2024_v2 = vadd.f32 %v2023_v62, %v2022_v56  ;;  %v4394_v61 = vmov 1983009808  }
 0x24a   :  { %v2018_v3 = vadd.f32 %v2017_v63, %v2016_v59  ;;  %v2030_v4 = vadd.f32 %v2029_v0, %v2028_v60  ;;  %v2089_v62 = vunpack.c.l.s4 %v4394_v61  ;;  %v2091_v63 = vlaneseq }
 0x24b   :  { %v2013_v5 = vrot.slane %v2012_v1, 1  ;;  %v2025_v6 = vrot.slane %v2024_v2, 1 }
 0x24c   :  { %v2019_v7 = vrot.slane %v2018_v3, 1  ;;  %v2031_v8 = vrot.slane %v2030_v4, 1  ;;  %v2090_v0 = vunpack.c.0.s8 %v2089_v62 }
 0x24d   :  { %v2014_v9 = vadd.f32 %v2013_v5, %v2012_v1  ;;  %v2026_v12 = vadd.f32 %v2025_v6, %v2024_v2  ;;  %v4570_v1 = vshrl.u32 %v2091_v63, 7 }
 0x24e   :  { %v2020_v13 = vadd.f32 %v2019_v7, %v2018_v3  ;;  %v2032_v14 = vadd.f32 %v2031_v8, %v2030_v4 }
 0x24f   :  { %v4554_v15 = vmul.f32 0.125, %v2014_v9  ;;  %v4556_v16 = vmul.f32 0.125, %v2026_v12  ;;  %v4573_v4 = vsub.s32 %v2090_v0, %v4570_v1 }
 0x250   :  { %v4558_v17 = vmul.f32 0.125, %v2020_v13  ;;  %v4560_v18 = vmul.f32 0.125, %v2032_v14  ;;  %v2008_v13 = vld [vmem:[#allocation7] sm:$0xff]  ;;  %v4578_v14 = vsub.s32 0, %v4570_v1 }
 0x251   :  { %v2038_v19 = vsub.f32 %v4538_v45, %v4554_v15  ;;  %v2040_v20 = vsub.f32 %v4540_v46, %v4556_v16 }
 0x252   :  { %v2039_v21 = vsub.f32 %v4544_v49, %v4558_v17  ;;  %v2041_v10 = vsub.f32 %v4546_v50, %v4560_v18 }
 0x253   :  { %v2042_v11 = vmul.f32 %v2038_v19, %v2038_v19  ;;  %v2044_v22 = vmul.f32 %v2040_v20, %v2040_v20  ;;  %v2112_v20 = vsub.s32 2, %v4570_v1 }
 0x254   :  { %v2043_v23 = vmul.f32 %v2039_v21, %v2039_v21  ;;  %v2045_v24 = vmul.f32 %v2041_v10, %v2041_v10  ;;  %v2116_v21 = vsub.s32 4, %v4570_v1  ;;  %v2120_v10 = vsub.s32 6, %v4570_v1 }
 0x255   :  { %v2046_v25 = vrot.slane %v2042_v11, 4  ;;  %v2058_v26 = vrot.slane %v2044_v22, 4 }
 0x256   :  { %v2052_v27 = vrot.slane %v2043_v23, 4  ;;  %v2064_v28 = vrot.slane %v2045_v24, 4 }
 0x257   :  { %v2047_v29 = vadd.f32 %v2046_v25, %v2042_v11  ;;  %v2059_v30 = vadd.f32 %v2058_v26, %v2044_v22 }
 0x258   :  { %v2053_v31 = vadd.f32 %v2052_v27, %v2043_v23  ;;  %v2065_v32 = vadd.f32 %v2064_v28, %v2045_v24 }
 0x259   :  { %v2048_v33 = vrot.slane %v2047_v29, 2  ;;  %v2060_v34 = vrot.slane %v2059_v30, 2 }
 0x25a   :  { %v2054_v35 = vrot.slane %v2053_v31, 2  ;;  %v2066_v36 = vrot.slane %v2065_v32, 2 }
 0x25b   :  { %v2049_v37 = vadd.f32 %v2048_v33, %v2047_v29  ;;  %v2061_v38 = vadd.f32 %v2060_v34, %v2059_v30 }
 0x25c   :  { %v2055_v39 = vadd.f32 %v2054_v35, %v2053_v31  ;;  %v2067_v40 = vadd.f32 %v2066_v36, %v2065_v32 }
 0x25d   :  { %v2050_v41 = vrot.slane %v2049_v37, 1  ;;  %v2062_v42 = vrot.slane %v2061_v38, 1 }
 0x25e   :  { %v2056_v43 = vrot.slane %v2055_v39, 1  ;;  %v2068_v44 = vrot.slane %v2067_v40, 1 }
 0x25f   :  { %v2051_v47 = vadd.f32 %v2050_v41, %v2049_v37  ;;  %v2063_v48 = vadd.f32 %v2062_v42, %v2061_v38  ;;  %v2189_v41 = vsub.s32 7, %v4570_v1  ;;  %v2181_v42 = vsub.s32 3, %v4570_v1 }
 0x260   :  { %v2057_v51 = vadd.f32 %v2056_v43, %v2055_v39  ;;  %v2069_v52 = vadd.f32 %v2068_v44, %v2067_v40  ;;  %v4601_v39 = vsub.s32 1, %v4570_v1 }
 0x261   :  { %v2070_v53 = vmul.f32 0.125, %v2051_v47  ;;  %v2072_v54 = vmul.f32 0.125, %v2063_v48 }
 0x262   :  { %v2071_v55 = vmul.f32 0.125, %v2057_v51  ;;  %v2073_v56 = vmul.f32 0.125, %v2069_v52 }
 0x263   :  { %v2074_v57 = vadd.f32 1e-05, %v2070_v53  ;;  %v2076_v58 = vadd.f32 1e-05, %v2072_v54 }
 0x264   :  { %v2075_v59 = vadd.f32 1e-05, %v2071_v55  ;;  %v2077_v60 = vadd.f32 1e-05, %v2073_v56 }
 0x265   :  { %4170 = vrsqrt.f32 %v2074_v57 }
 0x266   :  { %4172 = vrsqrt.f32 %v2076_v58 }
 0x267   :  { %4174 = vrsqrt.f32 %v2075_v59 }
 0x268   :  { %4176 = vrsqrt.f32 %v2077_v60 }
 0x26f   :  { %v4171_v2 = vpop.eup %4170 }
 0x270   :  { %v4173_v3 = vpop.eup %4172 }
 0x271   :  { %v4175_v5 = vpop.eup %4174 }
 0x272   :  { %v4177_v6 = vpop.eup %4176  ;;  %v2086_v7 = vcombine.low %v4171_v2, %v4175_v5 }
 0x273   :  { %v2087_v8 = vcombine.low %v4173_v3, %v4177_v6 }
 0x274   :  { %v2094_v9 = vrot.slane %v2086_v7, %v4573_v4 }
 0x275   :  { %v2101_v12 = vrot.slane %v2087_v8, %v4573_v4  ;;  %v4098_v8 = vld [vmem:[#allocation8 + $0x100] ss:$8 sps:$4 sm:$0xff]  }
 0x277   :  { %v2102_v19 = vcombine.low %v2094_v9, %v2101_v12  ;;  %v4103_v12 = vld [vmem:[#allocation8 + $0x114] ss:$8 sps:$4 sm:$0xff]  }
 0x279   :  { %v2104_v11 = vmul.f32 %v2102_v19, %v2008_v13  ;;  %v4101_v19 = vld [vmem:[#allocation8 + $0x110] ss:$8 sps:$4 sm:$0xff]  }
 0x27b   :  { %v2109_v22 = vrot.slane %v2104_v11, %v4578_v14  ;;  %v2113_v23 = vrot.slane %v2104_v11, %v2112_v20  ;;  %v2117_v24 = vrot.slane %v2104_v11, %v2116_v21  ;;  %v2121_v25 = vrot.slane %v2104_v11, %v2120_v10  ;;  %v4106_v21 = vld [vmem:[#allocation8 + $0x124] ss:$8 sps:$4 sm:$0xff]   ;;  %v4104_v10 = vld [vmem:[#allocation8 + $0x120] ss:$8 sps:$4 sm:$0xff]   ;;  %v4109_v11 = vld [vmem:[#allocation8 + $0x134] ss:$8 sps:$4 sm:$0xff]  }
 0x27d   :  { %v2126_v26 = vmul.f32 %v2109_v22, %v4554_v15  ;;  %v2127_v27 = vmul.f32 %v2113_v23, %v4558_v17  ;;  %v2128_v28 = vmul.f32 %v2117_v24, %v4556_v16  ;;  %v2129_v29 = vmul.f32 %v2121_v25, %v4560_v18 }
 0x27e   :  { %v2165_v30 = vrot.slane %v2117_v24, %v4578_v14  ;;  %v2169_v31 = vrot.slane %v2121_v25, %v4578_v14  ;;  %v2161_v32 = vrot.slane %v2113_v23, %v4578_v14  ;;  %v2157_v33 = vrot.slane %v2109_v22, %v4578_v14  ;;  %v4107_v22 = vld [vmem:[#allocation8 + $0x130] ss:$8 sps:$4 sm:$0xff]   ;;  %v4112_v23 = vld [vmem:[#allocation8 + $0x144] ss:$8 sps:$4 sm:$0xff]   ;;  %v4110_v24 = vld [vmem:[#allocation8 + $0x140] ss:$8 sps:$4 sm:$0xff]  }
 0x27f   :  { %v2134_v34 = vcombine.low %v2126_v26, %v2127_v27  ;;  %v2135_v35 = vcombine.low %v2128_v28, %v2129_v29  ;;  %v4115_v25 = vld [vmem:[#allocation8 + $0x154] ss:$8 sps:$4 sm:$0xff]   ;;  %v4113_v26 = vld [vmem:[#allocation8 + $0x150] ss:$8 sps:$4 sm:$0xff]   ;;  %v4118_v27 = vld [vmem:[#allocation8 + $0x164] ss:$8 sps:$4 sm:$0xff]  }
 0x280   :  { %v2173_v36 = vmul.f32 %v2169_v31, %v4546_v50  ;;  %v2171_v15 = vmul.f32 %v2161_v32, %v4544_v49  ;;  %v2170_v17 = vmul.f32 %v2157_v33, %v4538_v45  ;;  %v2172_v16 = vmul.f32 %v2165_v30, %v4540_v46  ;;  %v4116_v28 = vld [vmem:[#allocation8 + $0x160] ss:$8 sps:$4 sm:$0xff]   ;;  %v4121_v29 = vld [vmem:[#allocation8 + $0x174] ss:$8 sps:$4 sm:$0xff]   ;;  %v4119_v30 = vld [vmem:[#allocation8 + $0x170] ss:$8 sps:$4 sm:$0xff]  }
 0x281   :  { %v2142_v18 = vrot.slane %v2134_v34, %v4573_v4  ;;  %v2149_v37 = vrot.slane %v2135_v35, %v4573_v4  ;;  %v2185_v50 = vsub.s32 5, %v4570_v1  ;;  %v4124_v31 = vld [vmem:[#allocation8 + $0x184] ss:$8 sps:$4 sm:$0xff]   ;;  %v4122_v33 = vld [vmem:[#allocation8 + $0x180] ss:$8 sps:$4 sm:$0xff]  }
 0x282   :  { %v4127_v34 = vld [vmem:[#allocation8 + $0x194] ss:$8 sps:$4 sm:$0xff]   ;;  %v4125_v35 = vld [vmem:[#allocation8 + $0x190] ss:$8 sps:$4 sm:$0xff]  }
 0x283   :  { %v2150_v38 = vcombine.low %v2142_v18, %v2149_v37  ;;  %v4136_v37 = vld [vmem:[#allocation8 + $0x1c4] ss:$8 sps:$4 sm:$0xff]  }
 0x285   :  { %v2151_v40 = vrot.slane %v2150_v38, 7  ;;  %v4134_v38 = vld [vmem:[#allocation8 + $0x1c0] ss:$8 sps:$4 sm:$0xff]  }
 0x287   :  { %v2153_v49 = vsub.f32 %v2008_v13, %v2151_v40 }
 0x289   :  { %v2190_v43 = vrot.slane %v2153_v49, %v2189_v41  ;;  %v2182_v45 = vrot.slane %v2153_v49, %v2181_v42  ;;  %v2178_v46 = vrot.slane %v2153_v49, %v4601_v39  ;;  %v2186_v44 = vrot.slane %v2153_v49, %v2185_v50  ;;  %v4139_v41 = vld [vmem:[#allocation8 + $0x1d4] ss:$8 sps:$4 sm:$0xff]   ;;  %v4137_v50 = vld [vmem:[#allocation8 + $0x1d0] ss:$8 sps:$4 sm:$0xff]   ;;  %v4142_v49 = vld [vmem:[#allocation8 + $0x1e4] ss:$8 sps:$4 sm:$0xff]  }
 0x28b   :  { %v2210_v47 = vrot.slane %v2190_v43, %v4601_v39  ;;  %v2202_v48 = vrot.slane %v2182_v45, %v4601_v39  ;;  %v2198_v51 = vrot.slane %v2178_v46, %v4601_v39  ;;  %v2206_v52 = vrot.slane %v2186_v44, %v4601_v39  ;;  %v4140_v43 = vld [vmem:[#allocation8 + $0x1e0] ss:$8 sps:$4 sm:$0xff]   ;;  %v4145_v45 = vld [vmem:[#allocation8 + $0x1f4] ss:$8 sps:$4 sm:$0xff]   ;;  %v4143_v46 = vld [vmem:[#allocation8 + $0x1f0] ss:$8 sps:$4 sm:$0xff]  }
 0x28d   :  { %v2214_v53 = vadd.f32 %v2210_v47, %v2173_v36  ;;  %v2212_v54 = vadd.f32 %v2202_v48, %v2171_v15  ;;  %v2211_v55 = vadd.f32 %v2198_v51, %v2170_v17  ;;  %v2213_v56 = vadd.f32 %v2206_v52, %v2172_v16  ;;  %v4130_v36 = vld [vmem:[#allocation8 + $0x1a4] ss:$8 sps:$4 sm:$0xff]   ;;  %v4128_v15 = vld [vmem:[#allocation8 + $0x1a0] ss:$8 sps:$4 sm:$0xff]   ;;  %v4133_v17 = vld [vmem:[#allocation8 + $0x1b4] ss:$8 sps:$4 sm:$0xff]  }
 0x28e   :  { %v4131_v16 = vld [vmem:[#allocation8 + $0x1b0] ss:$8 sps:$4 sm:$0xff]   ;;  %v4146_v48 = vld [vmem:[#allocation10 + $0x40] sm:$0xff]   ;;  %v4148_v52 = vld [vmem:[#allocation10 + $0x48] sm:$0xff]  }
 0x28f   :  { %v3470_v57 = vmul.f32 -1.442695, %v2214_v53  ;;  %v3468_v58 = vmul.f32 -1.442695, %v2212_v54  ;;  %v3467_v59 = vmul.f32 -1.442695, %v2211_v55  ;;  %3563 = vmatprep.subr.bf16.mxu1 %v4146_v48 }
 0x290   :  { %v3469_v32 = vmul.f32 -1.442695, %v2213_v56  ;;  %v4147_v51 = vld [vmem:[#allocation10] sm:$0xff]   ;;  %v4149_v53 = vld [vmem:[#allocation10 + $0x8] sm:$0xff]   ;;  %v4150_v54 = vld [vmem:[#allocation10 + $0x50] sm:$0xff]  }
 0x291   :  { %4178 = vpow2.f32 %v3470_v57  ;;  %3564 = vmatpush3.bf16.msra.mxu1 %v4147_v51  ;;  %v4151_v55 = vld [vmem:[#allocation10 + $0x10] sm:$0xff]   ;;  %v4152_v56 = vld [vmem:[#allocation10 + $0x58] sm:$0xff]  }
 0x292   :  { %4180 = vpow2.f32 %v3468_v58  ;;  %3565 = vmatprep.subr.bf16.mxu1 %v4148_v52  ;;  %v4153_v57 = vld [vmem:[#allocation10 + $0x18] sm:$0xff]   ;;  %v4154_v58 = vld [vmem:[#allocation10 + $0x60] sm:$0xff]  }
 0x293   :  { %4182 = vpow2.f32 %v3467_v59  ;;  %v4155_v59 = vld [vmem:[#allocation10 + $0x20] sm:$0xff]  }
 0x295   :  { %3566 = vmatpush3.bf16.msra.mxu1 %v4149_v53 }
 0x296   :  { %3567 = vmatprep.subr.bf16.mxu1 %v4150_v54 }
 0x299   :  { %3568 = vmatpush3.bf16.msra.mxu1 %v4151_v55 }
 0x29a   :  { %3569 = vmatprep.subr.bf16.mxu1 %v4152_v56 }
 0x29b   :  { %v4179_v60 = vpop.eup %4178 }
 0x29c   :  { %v4181_v61 = vpop.eup %4180  ;;  %v2230_v62 = vadd.f32 1.0, %v4179_v60  ;;  %v4156_v60 = vld [vmem:[#allocation10 + $0x68] sm:$0xff]  }
 0x29d   :  { %v4183_v63 = vpop.eup %4182  ;;  %v2228_v0 = vadd.f32 1.0, %v4181_v61  ;;  %3570 = vmatpush3.bf16.msra.mxu1 %v4153_v57  ;;  %v4157_v61 = vld [vmem:[#allocation10 + $0x28] sm:$0xff]  }
 0x29e   :  { %v2227_v2 = vadd.f32 1.0, %v4183_v63  ;;  %4184 = vrcp.f32 %v2230_v62  ;;  %3571 = vmatprep.subr.bf16.mxu1 %v4154_v58  ;;  %v4158_v62 = vld [vmem:[#allocation10 + $0x70] sm:$0xff]  }
 0x29f   :  { %4186 = vrcp.f32 %v2228_v0  ;;  %v4159_v63 = vld [vmem:[#allocation10 + $0x30] sm:$0xff]   ;;  %v4160_v0 = vld [vmem:[#allocation10 + $0x78] sm:$0xff]  }
 0x2a0   :  { %4188 = vrcp.f32 %v2227_v2  ;;  %v4161_v2 = vld [vmem:[#allocation10 + $0x38] sm:$0xff]  }
 0x2a1   :  { %4190 = vpow2.f32 %v3469_v32  ;;  %3572 = vmatpush3.bf16.msra.mxu1 %v4155_v59 }
 0x2a2   :  { %3573 = vmatprep.subr.bf16.mxu1 %v4156_v60 }
 0x2a5   :  { %3574 = vmatpush3.bf16.msra.mxu1 %v4157_v61 }
 0x2a6   :  { %3575 = vmatprep.subr.bf16.mxu1 %v4158_v62 }
 0x2a8   :  { %v4185_v3 = vpop.eup %4184 }
 0x2a9   :  { %v4187_v5 = vpop.eup %4186  ;;  %v2242_v13 = vpack.c.bf16 %v4185_v3, %v4185_v3  ;;  %3576 = vmatpush3.bf16.msra.mxu1 %v4159_v63 }
 0x2aa   :  { %v4189_v6 = vpop.eup %4188  ;;  %v2240_v7 = vpack.c.bf16 %v4187_v5, %v4187_v5  ;;  %3577 = vmatprep.subr.bf16.mxu1 %v4160_v0 }
 0x2ab   :  { %v2239_v9 = vpack.c.bf16 %v4189_v6, %v4189_v6  ;;  %v4191_v18 = vpop.eup %4190 }
 0x2ac   :  { %2659 = vmatprep.mubr.bf16.mxu0 %v2240_v7  ;;  %v2229_v40 = vadd.f32 1.0, %v4191_v18 }
 0x2ad   :  { %2660 = vmatmul.mubr.bf16.vlgmr.msra.gmra.mrb[4].mxu0 %v2239_v9  ;;  %3578 = vmatpush3.bf16.msra.mxu1 %v4161_v2 }
 0x2ae   :  { %2669 = vmatpush1.bf16.msra.mxu0 %v4098_v8  ;;  %2700 = vmatprep.mubr.bf16.mxu0 %v2242_v13  ;;  %4192 = vrcp.f32 %v2229_v40 }
 0x2af   :  { %2670 = vmatprep.subr.bf16.mxu0 %v4103_v12 }
 0x2b2   :  { %2671 = vmatpush1.bf16.msra.mxu0 %v4101_v19 }
 0x2b3   :  { %2672 = vmatprep.subr.bf16.mxu0 %v4106_v21 }
 0x2b6   :  { %2673 = vmatpush1.bf16.msra.mxu0 %v4104_v10 }
 0x2b7   :  { %2674 = vmatprep.subr.bf16.mxu0 %v4109_v11 }
 0x2b8   :  { %v4193_v44 = vpop.eup %4192 }
 0x2b9   :  { %v2241_v47 = vpack.c.bf16 %v4193_v44, %v4193_v44 }
 0x2ba   :  { %2675 = vmatpush1.bf16.msra.mxu0 %v4107_v22 }
 0x2bb   :  { %2676 = vmatprep.subr.bf16.mxu0 %v4112_v23 }
 0x2be   :  { %2677 = vmatpush1.bf16.msra.mxu0 %v4110_v24 }
 0x2bf   :  { %2678 = vmatprep.subr.bf16.mxu0 %v4115_v25 }
 0x2c2   :  { %2679 = vmatpush1.bf16.msra.mxu0 %v4113_v26 }
 0x2c3   :  { %2680 = vmatprep.subr.bf16.mxu0 %v4118_v27 }
 0x2c6   :  { %2681 = vmatpush1.bf16.msra.mxu0 %v4116_v28 }
 0x2c7   :  { %2682 = vmatprep.subr.bf16.mxu0 %v4121_v29 }
 0x2ca   :  { %2683 = vmatpush1.bf16.msra.mxu0 %v4119_v30 }
 0x2cb   :  { %2684 = vmatprep.subr.bf16.mxu0 %v4124_v31 }
 0x2ce   :  { %2685 = vmatpush1.bf16.msra.mxu0 %v4122_v33 }
 0x2cf   :  { %2686 = vmatprep.subr.bf16.mxu0 %v4127_v34 }
 0x2d2   :  { %2687 = vmatpush1.bf16.msra.mxu0 %v4125_v35 }
 0x2d3   :  { %2688 = vmatprep.subr.bf16.mxu0 %v4130_v36 }
 0x2d6   :  { %2689 = vmatpush1.bf16.msra.mxu0 %v4128_v15 }
 0x2d7   :  { %2690 = vmatprep.subr.bf16.mxu0 %v4133_v17 }
 0x2da   :  { %2691 = vmatpush1.bf16.msra.mxu0 %v4131_v16 }
 0x2db   :  { %2692 = vmatprep.subr.bf16.mxu0 %v4136_v37 }
 0x2de   :  { %2693 = vmatpush1.bf16.msra.mxu0 %v4134_v38 }
 0x2df   :  { %2694 = vmatprep.subr.bf16.mxu0 %v4139_v41 }
 0x2e2   :  { %2695 = vmatpush1.bf16.msra.mxu0 %v4137_v50 }
 0x2e3   :  { %2696 = vmatprep.subr.bf16.mxu0 %v4142_v49 }
 0x2e6   :  { %2697 = vmatpush1.bf16.msra.mxu0 %v4140_v43 }
 0x2e7   :  { %2698 = vmatprep.subr.bf16.mxu0 %v4145_v45 }
 0x2ea   :  { %2699 = vmatpush1.bf16.msra.mxu0 %v4143_v46 }
 0x2ed   :  { %2701 = vmatmul.mubr.bf16.vlgmr.msra.gmra.mrb[4].mxu0 %v2241_v47  ;;  %v2709_v47 = vld [vmem:[%s4654_s4] sm:$0xf] }
 0x3c0   :  { %v2702_v3 = vpop.f32.mrb[4].mxu0 }
 0x3c1   :  { %v2710_v5 = vrot.slane %v2702_v3, 4  ;;  %v2704_v6 = vpop.f32.mrb[5].mxu0 }
 0x3c2   :  { %v2716_v7 = vrot.slane %v2704_v6, 4  ;;  %v2706_v8 = vpop.f32.mrb[6].mxu0 }
 0x3c3   :  { %v2711_v9 = vadd.f32 %v2710_v5, %v2702_v3  ;;  %v2707_v12 = vpop.f32.mrb[7].mxu0 }
 0x3c4   :  { %v2717_v13 = vadd.f32 %v2716_v7, %v2704_v6 }
 0x3c5   :  { %v2712_v19 = vrot.slane %v2711_v9, 2 }
 0x3c6   :  { %v2718_v21 = vrot.slane %v2717_v13, 2 }
 0x3c7   :  { %v2713_v10 = vadd.f32 %v2712_v19, %v2711_v9 }
 0x3c8   :  { %v2719_v11 = vadd.f32 %v2718_v21, %v2717_v13 }
 0x3c9   :  { %v2714_v22 = vrot.slane %v2713_v10, 1 }
 0x3ca   :  { %v2720_v23 = vrot.slane %v2719_v11, 1 }
 0x3cb   :  { %v2715_v24 = vadd.f32 %v2714_v22, %v2713_v10  ;;  %v4162_v10 = vld [vmem:[#allocation11] sm:$0xff]   ;;  %v4163_v22 = vld [vmem:[#allocation11 + $0x8] sm:$0xff]  }
 0x3cc   :  { %v2721_v25 = vadd.f32 %v2720_v23, %v2719_v11  ;;  %v4395_v11 = vmov 0.0   ;;  %v4164_v23 = vld [vmem:[#allocation11 + $0x10] sm:$0xff]  }
 0x3cd   :  { %v2722_v26 = vmul.f32 0.125, %v2715_v24  ;;  %3594 = vmatprep.subr.bf16.mxu1 %v4395_v11  ;;  %v4165_v24 = vld [vmem:[#allocation11 + $0x18] sm:$0xff]  }
 0x3ce   :  { %v2723_v27 = vmul.f32 0.125, %v2721_v25  ;;  %v4166_v25 = vld [vmem:[#allocation11 + $0x20] sm:$0xff]  }
 0x3cf   :  { %v2724_v28 = vsub.f32 %v2702_v3, %v2722_v26 }
 0x3d0   :  { %v2725_v29 = vsub.f32 %v2704_v6, %v2723_v27 }
 0x3d1   :  { %v2726_v30 = vmul.f32 %v2724_v28, %v2724_v28  ;;  %v4169_v28 = vld [vmem:[#allocation11 + $0x38] sm:$0xff]  }
 0x3d2   :  { %v2727_v31 = vmul.f32 %v2725_v29, %v2725_v29 }
 0x3d3   :  { %v2728_v32 = vrot.slane %v2726_v30, 4 }
 0x3d4   :  { %v2734_v33 = vrot.slane %v2727_v31, 4 }
 0x3d5   :  { %v2729_v34 = vadd.f32 %v2728_v32, %v2726_v30 }
 0x3d6   :  { %v2735_v35 = vadd.f32 %v2734_v33, %v2727_v31 }
 0x3d7   :  { %v2730_v36 = vrot.slane %v2729_v34, 2 }
 0x3d8   :  { %v2736_v15 = vrot.slane %v2735_v35, 2 }
 0x3d9   :  { %v2731_v17 = vadd.f32 %v2730_v36, %v2729_v34 }
 0x3da   :  { %v2737_v16 = vadd.f32 %v2736_v15, %v2735_v35 }
 0x3db   :  { %v2732_v18 = vrot.slane %v2731_v17, 1 }
 0x3dc   :  { %v2738_v37 = vrot.slane %v2737_v16, 1 }
 0x3dd   :  { %v2733_v38 = vadd.f32 %v2732_v18, %v2731_v17 }
 0x3de   :  { %v2739_v40 = vadd.f32 %v2738_v37, %v2737_v16 }
 0x3df   :  { %v2740_v41 = vmul.f32 0.125, %v2733_v38 }
 0x3e0   :  { %v2741_v50 = vmul.f32 0.125, %v2739_v40 }
 0x3e1   :  { %v2742_v49 = vadd.f32 1e-05, %v2740_v41 }
 0x3e2   :  { %v2743_v43 = vadd.f32 1e-05, %v2741_v50 }
 0x3e3   :  { %4194 = vrsqrt.f32 %v2742_v49 }
 0x3e4   :  { %4196 = vrsqrt.f32 %v2743_v43 }
 0x3ed   :  { %v4195_v45 = vpop.eup %4194 }
 0x3ee   :  { %v4197_v46 = vpop.eup %4196 }
 0x3ef   :  { %v2748_v44 = vcombine.low %v4195_v45, %v4197_v46 }
 0x3f1   :  { %v2755_v48 = vrot.slane %v2748_v44, %v4573_v4 }
 0x3f3   :  { %v2757_v51 = vmul.f32 %v2755_v48, %v2709_v47 }
 0x3f5   :  { %v2762_v52 = vrot.slane %v2757_v51, %v4578_v14  ;;  %v2766_v53 = vrot.slane %v2757_v51, %v2112_v20 }
 0x3f7   :  { %v2769_v54 = vmul.f32 %v2762_v52, %v2722_v26  ;;  %v2770_v55 = vmul.f32 %v2766_v53, %v2723_v27  ;;  %v2787_v56 = vrot.slane %v2762_v52, %v4578_v14  ;;  %v2791_v57 = vrot.slane %v2766_v53, %v4578_v14  ;;  %v4167_v26 = vld [vmem:[#allocation11 + $0x28] sm:$0xff]   ;;  %v4168_v27 = vld [vmem:[#allocation11 + $0x30] sm:$0xff]  }
 0x3f9   :  { %v2773_v58 = vcombine.low %v2769_v54, %v2770_v55  ;;  %v2793_v59 = vmul.f32 %v2791_v57, %v2704_v6  ;;  %v2792_v60 = vmul.f32 %v2787_v56, %v2702_v3 }
 0x3fb   :  { %v2780_v61 = vrot.slane %v2773_v58, %v4573_v4 }
 0x3fd   :  { %v2781_v62 = vrot.slane %v2780_v61, 7 }
 0x3ff   :  { %v2783_v63 = vsub.f32 %v2709_v47, %v2781_v62  ;;  %v2997_v47 = vld [vmem:[%s4656_s6] sm:$0x3] }
 0x401   :  { %v2798_v0 = vrot.slane %v2783_v63, %v4601_v39  ;;  %v2802_v2 = vrot.slane %v2783_v63, %v2181_v42 }
 0x403   :  { %v2812_v20 = vrot.slane %v2802_v2, %v4601_v39  ;;  %v2808_v5 = vrot.slane %v2798_v0, %v4601_v39 }
 0x405   :  { %v2814_v7 = vadd.f32 %v2812_v20, %v2793_v59  ;;  %v2813_v8 = vadd.f32 %v2808_v5, %v2792_v60 }
 0x407   :  { %v3536_v9 = vmul.f32 -1.442695, %v2814_v7  ;;  %v3535_v12 = vmul.f32 -1.442695, %v2813_v8 }
 0x409   :  { %4198 = vpow2.f32 %v3536_v9 }
 0x40a   :  { %4200 = vpow2.f32 %v3535_v12 }
 0x413   :  { %v4199_v3 = vpop.eup %4198 }
 0x414   :  { %v4201_v6 = vpop.eup %4200  ;;  %v2822_v4 = vadd.f32 1.0, %v4199_v3 }
 0x415   :  { %v2821_v13 = vadd.f32 1.0, %v4201_v6 }
 0x416   :  { %4202 = vrcp.f32 %v2822_v4 }
 0x417   :  { %4204 = vrcp.f32 %v2821_v13 }
 0x420   :  { %v4203_v19 = vpop.eup %4202 }
 0x421   :  { %v4205_v21 = vpop.eup %4204  ;;  %v2828_v1 = vpack.c.bf16 %v4203_v19, %v4203_v19 }
 0x422   :  { %v2827_v42 = vpack.c.bf16 %v4205_v21, %v4205_v21 }
 0x423   :  { %2989 = vmatprep.mubr.bf16.mxu1 %v2828_v1 }
 0x424   :  { %2990 = vmatmul.mubr.bf16.vlgmr.msra.gmra.mrb[4].mxu1 %v2827_v42 }
 0x425   :  { %3595 = vmatpush3.bf16.msra.mxu1 %v4162_v10  ;;  %3610 = vmatprep.mubr.msk.bf16.mxu1 %vm4396_vm0, %v4395_v11 }
 0x426   :  { %3596 = vmatprep.subr.bf16.mxu1 %v4395_v11 }
 0x429   :  { %3597 = vmatpush3.bf16.msra.mxu1 %v4163_v22 }
 0x42a   :  { %3598 = vmatprep.subr.bf16.mxu1 %v4395_v11 }
 0x42d   :  { %3599 = vmatpush3.bf16.msra.mxu1 %v4164_v23 }
 0x42e   :  { %3600 = vmatprep.subr.bf16.mxu1 %v4395_v11 }
 0x431   :  { %3601 = vmatpush3.bf16.msra.mxu1 %v4165_v24 }
 0x432   :  { %3602 = vmatprep.subr.bf16.mxu1 %v4395_v11 }
 0x435   :  { %3603 = vmatpush3.bf16.msra.mxu1 %v4166_v25  ;;  %v3143_v25 = vld [vmem:[%s4658_s8] sm:$0x3]  ;;  %s4350_s8 = scalar_lea.vmem %s3192_s20, 128 }
 0x436   :  { %3604 = vmatprep.subr.bf16.mxu1 %v4395_v11  ;;  %p4351_p6 = scmp.ne.s32.totalorder %s3192_s20, %s4350_s8  ;;  %p4356_p8 = scmp.lt.s32.totalorder %s4350_s8, %s4350_s8 }
 0x438   :  { %p4357_p9 = por %p4356_p8, %p4355_p7 }
 0x439   :  { %3605 = vmatpush3.bf16.msra.mxu1 %v4167_v26 }
 0x43a   :  { %3606 = vmatprep.subr.bf16.mxu1 %v4395_v11  ;;  %p4358_p10 = pnand %p4357_p9, %p4351_p6 }
 0x43d   :  { %3607 = vmatpush3.bf16.msra.mxu1 %v4168_v27 }
 0x43e   :  { %3608 = vmatprep.subr.bf16.mxu1 %v4395_v11 }
 0x441   :  { %3609 = vmatpush3.bf16.msra.mxu1 %v4169_v28 }
 0x4f7   :  { %v3579_v29 = vpop.f32.mrb[4].mxu1 }
 0x4f8   :  { %v3580_v30 = vpop.f32.mrb[5].mxu1 }
 0x4f9   :  { %v3581_v31 = vadd.f32 %v3580_v30, %v3579_v29  ;;  %v3582_v32 = vpop.f32.mrb[6].mxu1 }
 0x4fa   :  { %v3583_v33 = vpop.f32.mrb[7].mxu1 }
 0x4fb   :  { %v2998_v34 = vrot.slane %v3581_v31, 4 }
 0x4fd   :  { %v2999_v35 = vadd.f32 %v3581_v31, %v2998_v34 }
 0x4ff   :  { %v3000_v36 = vrot.slane %v2999_v35, 2 }
 0x501   :  { %v3001_v15 = vadd.f32 %v3000_v36, %v2999_v35 }
 0x503   :  { %v3002_v17 = vrot.slane %v3001_v15, 1 }
 0x505   :  { %v3003_v16 = vadd.f32 %v3002_v17, %v3001_v15 }
 0x507   :  { %v3004_v18 = vmul.f32 0.125, %v3003_v16 }
 0x509   :  { %v3005_v37 = vsub.f32 %v3581_v31, %v3004_v18 }
 0x50b   :  { %v3006_v38 = vmul.f32 %v3005_v37, %v3005_v37 }
 0x50d   :  { %v3007_v40 = vrot.slane %v3006_v38, 4 }
 0x50f   :  { %v3008_v41 = vadd.f32 %v3007_v40, %v3006_v38 }
 0x511   :  { %v3009_v50 = vrot.slane %v3008_v41, 2 }
 0x513   :  { %v3010_v49 = vadd.f32 %v3009_v50, %v3008_v41 }
 0x515   :  { %v3011_v43 = vrot.slane %v3010_v49, 1 }
 0x517   :  { %v3012_v45 = vadd.f32 %v3011_v43, %v3010_v49 }
 0x519   :  { %v3013_v46 = vmul.f32 0.125, %v3012_v45 }
 0x51b   :  { %v3014_v44 = vadd.f32 1e-05, %v3013_v46 }
 0x51d   :  { %4206 = vrsqrt.f32 %v3014_v44 }
 0x527   :  { %v4207_v48 = vpop.eup %4206 }
 0x528   :  { %v3016_v51 = vmul.f32 %v4207_v48, %v2997_v47 }
 0x52a   :  { %v3017_v52 = vmul.f32 %v3016_v51, %v3004_v18  ;;  %v3025_v54 = vrot.slane %v3016_v51, %v4578_v14 }
 0x52c   :  { %v3019_v53 = vrot.slane %v3017_v52, 7  ;;  %v3026_v56 = vmul.f32 %v3581_v31, %v3025_v54 }
 0x52e   :  { %v3021_v55 = vsub.f32 %v2997_v47, %v3019_v53 }
 0x530   :  { %v3030_v57 = vrot.slane %v3021_v55, %v4601_v39 }
 0x532   :  { %v3031_v58 = vadd.f32 %v3030_v57, %v3026_v56 }
 0x534   :  { %v3553_v59 = vmul.f32 -1.442695, %v3031_v58 }
 0x536   :  { %4208 = vpow2.f32 %v3553_v59 }
 0x540   :  { %v4209_v60 = vpop.eup %4208 }
 0x541   :  { %v3035_v61 = vadd.f32 1.0, %v4209_v60 }
 0x543   :  { %4210 = vrcp.f32 %v3035_v61 }
 0x54d   :  { %v4211_v62 = vpop.eup %4210 }
 0x54e   :  { %v3038_v63 = vpack.c.bf16 %v4211_v62, %v4211_v62 }
 0x550   :  { %3611 = vmatmul.mubr.bf16.vlgmr.msra.gmra.mrb[8].mxu1 %v3038_v63 }
 0x623   :  { %v3137_v0 = vpop.f32.mrb[8].mxu1 }
 0x624   :  { %v3144_v2 = vrot.slane %v3137_v0, 4  ;;  %v3612_v20 = vpop.f32.mrb[9].mxu1 }
 0x625   :  { %v3140_v5 = vpop.f32.mrb[10].mxu1 }
 0x626   :  { %v3145_v7 = vadd.f32 %v3144_v2, %v3137_v0  ;;  %v3613_v8 = vpop.f32.mrb[11].mxu1 }
 0x628   :  { %v3146_v9 = vrot.slane %v3145_v7, 2 }
 0x62a   :  { %v3147_v12 = vadd.f32 %v3146_v9, %v3145_v7 }
 0x62c   :  { %v3148_v3 = vrot.slane %v3147_v12, 1 }
 0x62e   :  { %v3149_v6 = vadd.f32 %v3148_v3, %v3147_v12 }
 0x630   :  { %v3150_v4 = vmul.f32 0.125, %v3149_v6 }
 0x632   :  { %v3151_v13 = vsub.f32 %v3137_v0, %v3150_v4 }
 0x634   :  { %v3152_v19 = vmul.f32 %v3151_v13, %v3151_v13 }
 0x636   :  { %v3153_v21 = vrot.slane %v3152_v19, 4 }
 0x638   :  { %v3154_v1 = vadd.f32 %v3153_v21, %v3152_v19 }
 0x63a   :  { %v3155_v42 = vrot.slane %v3154_v1, 2 }
 0x63c   :  { %v3156_v10 = vadd.f32 %v3155_v42, %v3154_v1 }
 0x63e   :  { %v3157_v11 = vrot.slane %v3156_v10, 1 }
 0x640   :  { %v3158_v22 = vadd.f32 %v3157_v11, %v3156_v10 }
 0x642   :  { %v3159_v23 = vmul.f32 0.125, %v3158_v22 }
 0x644   :  { %v3160_v24 = vadd.f32 1e-05, %v3159_v23 }
 0x646   :  { %4212 = vrsqrt.f32 %v3160_v24 }
 0x650   :  { %v4213_v26 = vpop.eup %4212 }
 0x651   :  { %v3162_v27 = vmul.f32 %v4213_v26, %v3143_v25 }
 0x653   :  { %v3163_v28 = vmul.f32 %v3162_v27, %v3150_v4  ;;  %v3171_v30 = vrot.slane %v3162_v27, %v4578_v14 }
 0x655   :  { %v3165_v29 = vrot.slane %v3163_v28, 7  ;;  %v3172_v32 = vmul.f32 %v3171_v30, %v3137_v0 }
 0x657   :  { %v3167_v31 = vsub.f32 %v3143_v25, %v3165_v29 }
 0x659   :  { %v3176_v33 = vrot.slane %v3167_v31, %v4601_v39 }
 0x65b   :  { %v3177_v34 = vadd.f32 %v3176_v33, %v3172_v32 }
 0x65d   :  { %v3562_v35 = vmul.f32 -1.442695, %v3177_v34 }
 0x65f   :  { %4214 = vpow2.f32 %v3562_v35 }
 0x669   :  { %v4215_v36 = vpop.eup %4214 }
 0x66a   :  { %v3181_v15 = vadd.f32 1.0, %v4215_v36 }
 0x66c   :  { %4216 = vrcp.f32 %v3181_v15 }
 0x676   :  { %v4217_v17 = vpop.eup %4216 }
 0x677   :  { %3184 = vst [vmem:[#allocation13] sm:$0xff] %v4217_v17 }
 0x678   :  { %4361 = shalt.err (!%p4358_p10)
}
 0x679   :  { %s4362_s23 = scalar_lea.hbm %s4659_s9, 128 }
 0x67a   :  { %p4363_p11 = scmp.ne.s32.totalorder %s4659_s9, %s4362_s23  ;;  %p4366_p12 = scmp.lt.u32.totalorder %s4362_s23, %s4659_s9 }
 0x67c   :  { %p4368_p13 = pnand %p4366_p12, %p4363_p11 }
 0x67e   :  { %4371 = shalt.err (!%p4368_p13)
}
 0x67f   :  { %3194 = dma.vmem_to_hbm [thread:$0]  %s3192_s20, 128, %s4659_s9, [#allocation4]  }
 0x680   :  { %4380 = dma.done.wait [#allocation4], 128  }
 0x681   :  { %4381 = vsyncadd [#allocation4], 4294967168 }
 0x682   :  { %3198 = vsyncpa [#allocation3], 1 }
 0x683   :  { %3199 = vsyncpa [#allocation6], 1 }
 0x684   :  { %3200 = vsyncpa [#allocation9], 1 }
 0x685   :  { %3201 = vsyncpa [#allocation12], 1 }
 0x686   :  { %3202 = vsyncpa [#allocation4], 1 }

</bundles_post_ra>
